<compile_context>
chip_gen: v7x
topology: tpu7x:2x2x1
jax: 0.10.0
libtpu: 0.0.40
codegen_flags: <defaults>
</compile_context>

<pallas_src>
import math

import jax
import jax.numpy as jnp
import numpy as np
from jax.experimental import pallas as pl
from jax.experimental.pallas import tpu as pltpu

TWO_PI_30 = 30.0 * 2.0 * math.pi  # w normalization constant


def _leaky_relu(x, slope=0.01):
    return jnp.where(x >= 0.0, x, slope * x)


def phybounce_kernel(
    scalars_ref,   # SMEM f32[8] : [p1*dt, p2*dt, p3g*dt (3), pad(3)]
    x_ref,         # VMEM f32 [8, TB] : rows [b, vx, vy, vz, wx, wy, wz, pad]
    w1t_ref,       # [64, 8]   mm dtype : W1ᵀ, normalization folded, cols aligned to x rows
    w23t_ref,      # [64, 128] mm dtype : [W2ᵀ | W3ᵀ]
    w4t_ref,       # [8, 64]   mm dtype : W4ᵀ padded, output scaling folded
    bias_ref,      # [64, 8]   f32 : cols [b1, b2, b3, b4_pad, 0...]
    out_ref,       # VMEM f32 [8, TB] : rows [vnew(3), wnew(3), pad(2)]
):
    p1dt = scalars_ref[0]
    p2dt = scalars_ref[1]
    gx = scalars_ref[2]
    gy = scalars_ref[3]
    gz = scalars_ref[4]

    xf = x_ref[...]                          # f32 [8, TB]
    mm = w1t_ref.dtype

    b1 = bias_ref[:, 0:1]                    # [64, 1] f32, broadcast over lanes
    b2 = bias_ref[:, 1:2]
    b3 = bias_ref[:, 2:3]
    b4 = bias_ref[0:8, 3:4]                  # [8, 1]  f32 (scaled, padded)

    # ---- BounceModel MLP, feature-major: Wᵀ @ x, activations [64, TB] ----
    h = _leaky_relu(
        jnp.dot(w1t_ref[...], xf.astype(mm),
                preferred_element_type=jnp.float32) + b1)                   # [64, TB]
    h2 = _leaky_relu(
        jnp.dot(w23t_ref[:, 0:64], h.astype(mm),
                preferred_element_type=jnp.float32) + b2)
    h = h + h2 * h
    d = _leaky_relu(
        jnp.dot(w23t_ref[:, 64:128], h.astype(mm),
                preferred_element_type=jnp.float32) + b3)
    mlp = jnp.dot(w4t_ref[...], d.astype(mm),
                  preferred_element_type=jnp.float32) + b4                  # [8, TB]

    # ---- conditional bounce select (full-lane [*, TB] rows) ----
    cond = jnp.logical_and(xf[0:1, :] < 0.0, xf[3:4, :] < 0.0)              # [1, TB]
    v = jnp.where(cond, mlp[0:3, :], xf[1:4, :])                            # [3, TB]
    w = jnp.where(cond, mlp[3:6, :], xf[4:7, :])                            # [3, TB]

    # ---- physics update (dt pre-folded into p1/p2/p3g), all full-lane ----
    vx, vy, vz = v[0:1, :], v[1:2, :], v[2:3, :]
    wx, wy, wz = w[0:1, :], w[1:2, :], w[2:3, :]
    norm_v = jnp.sqrt(vx * vx + vy * vy + vz * vz)                          # [1, TB]
    drag = p1dt * norm_v
    vnx = vx - drag * vx + p2dt * (wy * vz - wz * vy) + gx
    vny = vy - drag * vy + p2dt * (wz * vx - wx * vz) + gy
    vnz = vz - drag * vz + p2dt * (wx * vy - wy * vx) + gz

    # Single full-tile store (rows 6:7 are padding, sliced off in the wrapper).
    out_ref[...] = jnp.concatenate(
        [vnx, vny, vnz, w, jnp.zeros((2, vx.shape[1]), jnp.float32)], axis=0)


def _round_up(x, m):
    return ((x + m - 1) // m) * m


def phybounce_forward(params, b, v, w, dt, *, tile_b=2048,
                      matmul_dtype=jnp.bfloat16):
    f32 = jnp.float32

    # Accept [B,3] or [B,1,3] like the PyTorch module.
    squeeze_mid = (v.ndim == 3)
    if squeeze_mid:
        b = b.reshape(b.shape[0], 1)
        v = v.reshape(v.shape[0], 3)
        w = w.reshape(w.shape[0], 3)
    B = v.shape[0]

    b = b.astype(f32)
    v = v.astype(f32)
    w = w.astype(f32)

    # ---- tile selection (last block dim must be a multiple of 128) ----
    tile_b = max(128, (tile_b // 128) * 128)
    B_pad128 = _round_up(B, 128)
    if B_pad128 <= tile_b:
        if B_pad128 >= 1024 and B_pad128 % 256 == 0:
            tile_b = B_pad128 // 2      # grid=2 -> megacore sharding on v7x
        else:
            tile_b = B_pad128           # single tile: no per-step overhead
        B_pad = B_pad128
    else:
        B_pad = _round_up(B, tile_b)

    # ---- pack [b | v | w | pad] feature-major into one [8, B_pad] slab ----
    packed = jnp.concatenate([b, v, w, jnp.zeros((B, 1), f32)], axis=-1)    # [B, 8]
    if B_pad != B:
        packed = jnp.pad(packed, ((0, B_pad - B), (0, 0)))
    x_fm = packed.T                                                          # [8, B_pad]

    # ---- weights: transpose, fold scalings, pack lane-dense ----
    in_scale = jnp.concatenate(
        [jnp.full((3, 1), 1.0 / 3.0, f32),
         jnp.full((3, 1), 1.0 / TWO_PI_30, f32)], axis=0)                    # [6, 1]
    w1_scaled = params["W1"].astype(f32) * in_scale                          # [6, 64]
    w1t = jnp.zeros((64, 8), f32).at[:, 1:7].set(w1_scaled.T)                # cols match x rows

    w23t = jnp.concatenate(
        [params["W2"].astype(f32).T, params["W3"].astype(f32).T], axis=1)    # [64, 128]

    out_scale = jnp.concatenate(
        [jnp.full((1, 3), 3.0, f32),
         jnp.full((1, 3), TWO_PI_30, f32)], axis=1)                          # [1, 6]
    w4_scaled = params["W4"].astype(f32) * out_scale                         # [64, 6]
    w4t = jnp.zeros((8, 64), f32).at[0:6, :].set(w4_scaled.T)                # [8, 64]
    b4_scaled = (params["b4"].astype(f32) * out_scale).reshape(6)

    biases = jnp.zeros((64, 8), f32)
    biases = biases.at[:, 0].set(params["b1"].astype(f32).reshape(64))
    biases = biases.at[:, 1].set(params["b2"].astype(f32).reshape(64))
    biases = biases.at[:, 2].set(params["b3"].astype(f32).reshape(64))
    biases = biases.at[0:6, 3].set(b4_scaled)

    mm = lambda a: a.astype(matmul_dtype)

    # ---- dt-folded scalar parameters -> one SMEM f32[8] array ----
    p3g_dt = (params["p3"].reshape(3).astype(f32)
              + jnp.array([0.0, 0.0, -9.81], f32)) * dt
    scalars = jnp.concatenate([
        params["p1"].reshape(1).astype(f32) * dt,
        params["p2"].reshape(1).astype(f32) * dt,
        p3g_dt,
        jnp.zeros((3,), f32),
    ]).astype(f32)                                                           # f32[8]

    full = lambda shape: pl.BlockSpec(shape, lambda i: (0, 0))
    grid_spec = pltpu.PrefetchScalarGridSpec(
        num_scalar_prefetch=0,
        grid=(B_pad // tile_b,),
        in_specs=[
            pl.BlockSpec(memory_space=pltpu.MemorySpace.SMEM),   # scalars
            pl.BlockSpec((8, tile_b), lambda i: (0, i)),         # packed b/v/w
            full((64, 8)),                                       # W1ᵀ
            full((64, 128)),                                     # W2ᵀ | W3ᵀ
            full((8, 64)),                                       # W4ᵀ padded
            full((64, 8)),                                       # biases
        ],
        out_specs=pl.BlockSpec((8, tile_b), lambda i: (0, i)),
    )

    flops = 2 * B_pad * (8 * 64 + 64 * 64 + 64 * 64 + 64 * 8) + 48 * B_pad
    bytes_accessed = 2 * B_pad * 8 * 4 + (64 * 8 + 64 * 128 + 8 * 64 + 64 * 8) * 4
    cost = pl.CostEstimate(flops=flops, transcendentals=B_pad,
                           bytes_accessed=bytes_accessed)

    out = pl.pallas_call(
        phybounce_kernel,
        out_shape=jax.ShapeDtypeStruct((8, B_pad), f32),
        grid_spec=grid_spec,
        compiler_params=pltpu.CompilerParams(
            dimension_semantics=("parallel",),
            vmem_limit_bytes=32 * 1024 * 1024),
        cost_estimate=cost,
    )(scalars, x_fm, mm(w1t), mm(w23t), mm(w4t), biases)

    v_new = out[0:3, :B].T
    w_new = out[3:6, :B].T
    if squeeze_mid:
        v_new = v_new.reshape(B, 1, 3)
        w_new = w_new.reshape(B, 1, 3)
    return v_new, w_new


def make_params(key):
    """Deterministic synthetic init matching PhyBounce.__init__ shapes.

    nn.Linear(in, out) weights are stored directly as [in, out]; biases [1, out].
    Init is i.i.d. normal std=1e-4 as in the PyTorch module.
    """
    ks = jax.random.split(key, 11)
    std = 1e-4
    n = lambda k, s: (jax.random.normal(k, s, jnp.float32) * std)
    u = lambda k, s: (jax.random.uniform(k, s, jnp.float32) * 1e-4)
    return {
        "W1": n(ks[0], (6, 64)),  "b1": n(ks[1], (1, 64)),
        "W2": n(ks[2], (64, 64)), "b2": n(ks[3], (1, 64)),
        "W3": n(ks[4], (64, 64)), "b3": n(ks[5], (1, 64)),
        "W4": n(ks[6], (64, 6)),  "b4": n(ks[7], (1, 6)),
        "p1": u(ks[8], (1, 1)), "p2": u(ks[9], (1, 1)), "p3": u(ks[10], (1, 3)),
    }


def phybounce_ref(params, b, v, w, dt):
    """Pure-JAX (f32) reference of the PyTorch forward."""
    vn = v / 3.0
    wn = w / TWO_PI_30
    x = jnp.concatenate([vn, wn], axis=-1)
    h = _leaky_relu(x @ params["W1"] + params["b1"])
    h2 = _leaky_relu(h @ params["W2"] + params["b2"])
    h = h + h2 * h
    d = _leaky_relu(h @ params["W3"] + params["b3"])
    out = d @ params["W4"] + params["b4"]
    v_bc = out[:, :3] * 3.0
    w_bc = out[:, 3:] * TWO_PI_30
    cond = jnp.logical_and(b < 0.0, v[:, 2:3] < 0.0)
    v = jnp.where(cond, v_bc, v)
    w = jnp.where(cond, w_bc, w)
    norm_v = jnp.linalg.norm(v, axis=-1, keepdims=True)
    cross_wv = jnp.cross(w, v)
    acc = (-params["p1"] * norm_v * v + params["p2"] * cross_wv
           + params["p3"] + jnp.array([[0.0, 0.0, -9.81]], jnp.float32))
    return v + acc * dt, w


if __name__ == "__main__":
    key = jax.random.PRNGKey(0)
    kp, kb, kv, kw = jax.random.split(key, 4)

    params = make_params(kp)

    B = 512          # small demo batch -> single 512-row tile (grid = 1)
    b = jax.random.normal(kb, (B, 1), jnp.float32)          # some rows < 0 -> bounce path
    v = jax.random.normal(kv, (B, 3), jnp.float32) * 2.0
    w = jax.random.normal(kw, (B, 3), jnp.float32) * 5.0
    dt = 0.02

    v_new, w_new = phybounce_forward(params, b, v, w, dt)
    jax.block_until_ready((v_new, w_new))

    v_ref, w_ref = phybounce_ref(params, b, v, w, dt)
    np.testing.assert_allclose(np.asarray(v_new), np.asarray(v_ref), atol=1e-4, rtol=1e-3)
    np.testing.assert_allclose(np.asarray(w_new), np.asarray(w_ref), atol=1e-4, rtol=1e-3)

    print("KERNEL_OK")
</pallas_src>

<mosaic_0001>
module attributes {stable_mosaic.version = 11 : i64} {
  func.func @phybounce_kernel(%arg0: i32, %arg1: memref<8xf32, #tpu.memory_space<smem>>, %arg2: memref<8x512xf32, #tpu.memory_space<vmem>>, %arg3: memref<64x8xbf16, #tpu.memory_space<vmem>>, %arg4: memref<64x128xbf16, #tpu.memory_space<vmem>>, %arg5: memref<8x64xbf16, #tpu.memory_space<vmem>>, %arg6: memref<64x8xf32, #tpu.memory_space<vmem>>, %arg7: memref<8x512xf32, #tpu.memory_space<vmem>>) attributes {dimension_semantics = [#tpu.dimension_semantics<parallel>], iteration_bounds = array<i64: 1>, scalar_prefetch = 0 : i64, scratch_operands = 0 : i64, tpu.core_type = #tpu.core_type<tc>, window_params = [{transform_indices = @transform_0, window_bounds = array<i64: 8>}, {transform_indices = @transform_1, window_bounds = array<i64: 8, 512>}, {pipeline_mode = #tpu.pipeline_mode<synchronous>, transform_indices = @transform_2, window_bounds = array<i64: 64, 8>}, {pipeline_mode = #tpu.pipeline_mode<synchronous>, transform_indices = @transform_3, window_bounds = array<i64: 64, 128>}, {pipeline_mode = #tpu.pipeline_mode<synchronous>, transform_indices = @transform_4, window_bounds = array<i64: 8, 64>}, {pipeline_mode = #tpu.pipeline_mode<synchronous>, transform_indices = @transform_5, window_bounds = array<i64: 64, 8>}, {transform_indices = @transform_6, window_bounds = array<i64: 8, 512>}]} {
    %c0 = arith.constant 0 : index
    %0 = memref.load %arg1[%c0] : memref<8xf32, #tpu.memory_space<smem>>
    %c1 = arith.constant 1 : index
    %1 = memref.load %arg1[%c1] : memref<8xf32, #tpu.memory_space<smem>>
    %c2 = arith.constant 2 : index
    %2 = memref.load %arg1[%c2] : memref<8xf32, #tpu.memory_space<smem>>
    %c3 = arith.constant 3 : index
    %3 = memref.load %arg1[%c3] : memref<8xf32, #tpu.memory_space<smem>>
    %c4 = arith.constant 4 : index
    %4 = memref.load %arg1[%c4] : memref<8xf32, #tpu.memory_space<smem>>
    %c0_0 = arith.constant 0 : index
    %c0_1 = arith.constant 0 : index
    %5 = vector.load %arg2[%c0_0, %c0_1] : memref<8x512xf32, #tpu.memory_space<vmem>>, vector<8x512xf32>
    %c0_2 = arith.constant 0 : index
    %c0_3 = arith.constant 0 : index
    %6 = vector.load %arg6[%c0_2, %c0_3] : memref<64x8xf32, #tpu.memory_space<vmem>>, vector<64x1xf32>
    %c0_4 = arith.constant 0 : index
    %c1_5 = arith.constant 1 : index
    %7 = vector.load %arg6[%c0_4, %c1_5] : memref<64x8xf32, #tpu.memory_space<vmem>>, vector<64x1xf32>
    %c0_6 = arith.constant 0 : index
    %c2_7 = arith.constant 2 : index
    %8 = vector.load %arg6[%c0_6, %c2_7] : memref<64x8xf32, #tpu.memory_space<vmem>>, vector<64x1xf32>
    %c0_8 = arith.constant 0 : index
    %c3_9 = arith.constant 3 : index
    %9 = vector.load %arg6[%c0_8, %c3_9] : memref<64x8xf32, #tpu.memory_space<vmem>>, vector<8x1xf32>
    %c0_10 = arith.constant 0 : index
    %c0_11 = arith.constant 0 : index
    %10 = vector.load %arg3[%c0_10, %c0_11] : memref<64x8xbf16, #tpu.memory_space<vmem>>, vector<64x8xbf16>
    %11 = arith.truncf %5 : vector<8x512xf32> to vector<8x512xbf16>
    %cst = arith.constant dense<0.000000e+00> : vector<64x512xf32>
    %12 = tpu.matmul %10, %11, %cst {dimension_numbers = #tpu.dot_dimension_numbers<[1], [0], [0], [1], [0, 0, 1, 1], [], []>} : vector<64x8xbf16>, vector<8x512xbf16>, vector<64x512xf32> -> vector<64x512xf32>
    %13 = vector.broadcast %6 : vector<64x1xf32> to vector<64x512xf32>
    %14 = arith.addf %12, %13 : vector<64x512xf32>
    %cst_12 = arith.constant 0.000000e+00 : f32
    %15 = vector.broadcast %cst_12 : f32 to vector<64x512xf32>
    %16 = arith.cmpf oge, %14, %15 : vector<64x512xf32>
    %cst_13 = arith.constant 0.00999999977 : f32
    %17 = vector.broadcast %cst_13 : f32 to vector<64x512xf32>
    %18 = arith.mulf %17, %14 : vector<64x512xf32>
    %19 = arith.select %16, %14, %18 : vector<64x512xi1>, vector<64x512xf32>
    %c0_14 = arith.constant 0 : index
    %c0_15 = arith.constant 0 : index
    %20 = vector.load %arg4[%c0_14, %c0_15] : memref<64x128xbf16, #tpu.memory_space<vmem>>, vector<64x64xbf16>
    %21 = arith.truncf %19 : vector<64x512xf32> to vector<64x512xbf16>
    %cst_16 = arith.constant dense<0.000000e+00> : vector<64x512xf32>
    %22 = tpu.matmul %20, %21, %cst_16 {dimension_numbers = #tpu.dot_dimension_numbers<[1], [0], [0], [1], [0, 0, 1, 1], [], []>} : vector<64x64xbf16>, vector<64x512xbf16>, vector<64x512xf32> -> vector<64x512xf32>
    %23 = vector.broadcast %7 : vector<64x1xf32> to vector<64x512xf32>
    %24 = arith.addf %22, %23 : vector<64x512xf32>
    %cst_17 = arith.constant 0.000000e+00 : f32
    %25 = vector.broadcast %cst_17 : f32 to vector<64x512xf32>
    %26 = arith.cmpf oge, %24, %25 : vector<64x512xf32>
    %cst_18 = arith.constant 0.00999999977 : f32
    %27 = vector.broadcast %cst_18 : f32 to vector<64x512xf32>
    %28 = arith.mulf %27, %24 : vector<64x512xf32>
    %29 = arith.select %26, %24, %28 : vector<64x512xi1>, vector<64x512xf32>
    %30 = arith.mulf %29, %19 : vector<64x512xf32>
    %31 = arith.addf %19, %30 : vector<64x512xf32>
    %c0_19 = arith.constant 0 : index
    %c64 = arith.constant 64 : index
    %32 = vector.load %arg4[%c0_19, %c64] : memref<64x128xbf16, #tpu.memory_space<vmem>>, vector<64x64xbf16>
    %33 = arith.truncf %31 : vector<64x512xf32> to vector<64x512xbf16>
    %cst_20 = arith.constant dense<0.000000e+00> : vector<64x512xf32>
    %34 = tpu.matmul %32, %33, %cst_20 {dimension_numbers = #tpu.dot_dimension_numbers<[1], [0], [0], [1], [0, 0, 1, 1], [], []>} : vector<64x64xbf16>, vector<64x512xbf16>, vector<64x512xf32> -> vector<64x512xf32>
    %35 = vector.broadcast %8 : vector<64x1xf32> to vector<64x512xf32>
    %36 = arith.addf %34, %35 : vector<64x512xf32>
    %cst_21 = arith.constant 0.000000e+00 : f32
    %37 = vector.broadcast %cst_21 : f32 to vector<64x512xf32>
    %38 = arith.cmpf oge, %36, %37 : vector<64x512xf32>
    %cst_22 = arith.constant 0.00999999977 : f32
    %39 = vector.broadcast %cst_22 : f32 to vector<64x512xf32>
    %40 = arith.mulf %39, %36 : vector<64x512xf32>
    %41 = arith.select %38, %36, %40 : vector<64x512xi1>, vector<64x512xf32>
    %c0_23 = arith.constant 0 : index
    %c0_24 = arith.constant 0 : index
    %42 = vector.load %arg5[%c0_23, %c0_24] : memref<8x64xbf16, #tpu.memory_space<vmem>>, vector<8x64xbf16>
    %43 = arith.truncf %41 : vector<64x512xf32> to vector<64x512xbf16>
    %cst_25 = arith.constant dense<0.000000e+00> : vector<8x512xf32>
    %44 = tpu.matmul %42, %43, %cst_25 {dimension_numbers = #tpu.dot_dimension_numbers<[1], [0], [0], [1], [0, 0, 1, 1], [], []>} : vector<8x64xbf16>, vector<64x512xbf16>, vector<8x512xf32> -> vector<8x512xf32>
    %45 = vector.broadcast %9 : vector<8x1xf32> to vector<8x512xf32>
    %46 = arith.addf %44, %45 : vector<8x512xf32>
    %47 = vector.extract_strided_slice %5 {offsets = [0, 0], sizes = [1, 512], strides = [1, 1]} : vector<8x512xf32> to vector<1x512xf32>
    %cst_26 = arith.constant 0.000000e+00 : f32
    %48 = vector.broadcast %cst_26 : f32 to vector<1x512xf32>
    %49 = arith.cmpf olt, %47, %48 : vector<1x512xf32>
    %50 = vector.extract_strided_slice %5 {offsets = [3, 0], sizes = [1, 512], strides = [1, 1]} : vector<8x512xf32> to vector<1x512xf32>
    %cst_27 = arith.constant 0.000000e+00 : f32
    %51 = vector.broadcast %cst_27 : f32 to vector<1x512xf32>
    %52 = arith.cmpf olt, %50, %51 : vector<1x512xf32>
    %53 = arith.andi %49, %52 : vector<1x512xi1>
    %54 = vector.extract_strided_slice %46 {offsets = [0, 0], sizes = [3, 512], strides = [1, 1]} : vector<8x512xf32> to vector<3x512xf32>
    %55 = vector.extract_strided_slice %5 {offsets = [1, 0], sizes = [3, 512], strides = [1, 1]} : vector<8x512xf32> to vector<3x512xf32>
    %56 = vector.shape_cast %53 : vector<1x512xi1> to vector<1x512xi1>
    %57 = vector.broadcast %56 : vector<1x512xi1> to vector<3x512xi1>
    %58 = arith.select %57, %54, %55 : vector<3x512xi1>, vector<3x512xf32>
    %59 = vector.extract_strided_slice %46 {offsets = [3, 0], sizes = [3, 512], strides = [1, 1]} : vector<8x512xf32> to vector<3x512xf32>
    %60 = vector.extract_strided_slice %5 {offsets = [4, 0], sizes = [3, 512], strides = [1, 1]} : vector<8x512xf32> to vector<3x512xf32>
    %61 = vector.shape_cast %53 : vector<1x512xi1> to vector<1x512xi1>
    %62 = vector.broadcast %61 : vector<1x512xi1> to vector<3x512xi1>
    %63 = arith.select %62, %59, %60 : vector<3x512xi1>, vector<3x512xf32>
    %64 = vector.extract_strided_slice %58 {offsets = [0, 0], sizes = [1, 512], strides = [1, 1]} : vector<3x512xf32> to vector<1x512xf32>
    %65 = vector.extract_strided_slice %58 {offsets = [1, 0], sizes = [1, 512], strides = [1, 1]} : vector<3x512xf32> to vector<1x512xf32>
    %66 = vector.extract_strided_slice %58 {offsets = [2, 0], sizes = [1, 512], strides = [1, 1]} : vector<3x512xf32> to vector<1x512xf32>
    %67 = vector.extract_strided_slice %63 {offsets = [0, 0], sizes = [1, 512], strides = [1, 1]} : vector<3x512xf32> to vector<1x512xf32>
    %68 = vector.extract_strided_slice %63 {offsets = [1, 0], sizes = [1, 512], strides = [1, 1]} : vector<3x512xf32> to vector<1x512xf32>
    %69 = vector.extract_strided_slice %63 {offsets = [2, 0], sizes = [1, 512], strides = [1, 1]} : vector<3x512xf32> to vector<1x512xf32>
    %70 = arith.mulf %64, %64 : vector<1x512xf32>
    %71 = arith.mulf %65, %65 : vector<1x512xf32>
    %72 = arith.addf %70, %71 : vector<1x512xf32>
    %73 = arith.mulf %66, %66 : vector<1x512xf32>
    %74 = arith.addf %72, %73 : vector<1x512xf32>
    %75 = math.sqrt %74 : vector<1x512xf32>
    %76 = vector.broadcast %0 : f32 to vector<1x512xf32>
    %77 = arith.mulf %76, %75 : vector<1x512xf32>
    %78 = arith.mulf %77, %64 : vector<1x512xf32>
    %79 = arith.subf %64, %78 : vector<1x512xf32>
    %80 = arith.mulf %68, %66 : vector<1x512xf32>
    %81 = arith.mulf %69, %65 : vector<1x512xf32>
    %82 = arith.subf %80, %81 : vector<1x512xf32>
    %83 = vector.broadcast %1 : f32 to vector<1x512xf32>
    %84 = arith.mulf %83, %82 : vector<1x512xf32>
    %85 = arith.addf %79, %84 : vector<1x512xf32>
    %86 = vector.broadcast %2 : f32 to vector<1x512xf32>
    %87 = arith.addf %85, %86 : vector<1x512xf32>
    %88 = arith.mulf %77, %65 : vector<1x512xf32>
    %89 = arith.subf %65, %88 : vector<1x512xf32>
    %90 = arith.mulf %69, %64 : vector<1x512xf32>
    %91 = arith.mulf %67, %66 : vector<1x512xf32>
    %92 = arith.subf %90, %91 : vector<1x512xf32>
    %93 = vector.broadcast %1 : f32 to vector<1x512xf32>
    %94 = arith.mulf %93, %92 : vector<1x512xf32>
    %95 = arith.addf %89, %94 : vector<1x512xf32>
    %96 = vector.broadcast %3 : f32 to vector<1x512xf32>
    %97 = arith.addf %95, %96 : vector<1x512xf32>
    %98 = arith.mulf %77, %66 : vector<1x512xf32>
    %99 = arith.subf %66, %98 : vector<1x512xf32>
    %100 = arith.mulf %67, %65 : vector<1x512xf32>
    %101 = arith.mulf %68, %64 : vector<1x512xf32>
    %102 = arith.subf %100, %101 : vector<1x512xf32>
    %103 = vector.broadcast %1 : f32 to vector<1x512xf32>
    %104 = arith.mulf %103, %102 : vector<1x512xf32>
    %105 = arith.addf %99, %104 : vector<1x512xf32>
    %106 = vector.broadcast %4 : f32 to vector<1x512xf32>
    %107 = arith.addf %105, %106 : vector<1x512xf32>
    %cst_28 = arith.constant 0.000000e+00 : f32
    %108 = vector.broadcast %cst_28 : f32 to vector<2x512xf32>
    %109 = tpu.concatenate %87, %97, %107, %63, %108 in 0 : vector<1x512xf32>, vector<1x512xf32>, vector<1x512xf32>, vector<3x512xf32>, vector<2x512xf32> -> vector<8x512xf32>
    %c0_29 = arith.constant 0 : index
    %c0_30 = arith.constant 0 : index
    %110 = vector.load %arg7[%c0_29, %c0_30] : memref<8x512xf32, #tpu.memory_space<vmem>>, vector<8x512xf32>
    tpu.vector_store %arg7[%c0_29, %c0_30], %109 {strides = array<i32>} : memref<8x512xf32, #tpu.memory_space<vmem>>, vector<8x512xf32>,
    return
  }
  func.func @transform_0(%arg0: i32) -> i32 {
    %c0_i32 = arith.constant 0 : i32
    %c0_i32_0 = arith.constant 0 : i32
    return %c0_i32 : i32
  }
  func.func @transform_1(%arg0: i32) -> (i32, i32) {
    %c0_i32 = arith.constant 0 : i32
    %c0_i32_0 = arith.constant 0 : i32
    return %c0_i32, %arg0 : i32, i32
  }
  func.func @transform_2(%arg0: i32) -> (i32, i32) {
    %c0_i32 = arith.constant 0 : i32
    %c0_i32_0 = arith.constant 0 : i32
    %c0_i32_1 = arith.constant 0 : i32
    return %c0_i32, %c0_i32_0 : i32, i32
  }
  func.func @transform_3(%arg0: i32) -> (i32, i32) {
    %c0_i32 = arith.constant 0 : i32
    %c0_i32_0 = arith.constant 0 : i32
    %c0_i32_1 = arith.constant 0 : i32
    return %c0_i32, %c0_i32_0 : i32, i32
  }
  func.func @transform_4(%arg0: i32) -> (i32, i32) {
    %c0_i32 = arith.constant 0 : i32
    %c0_i32_0 = arith.constant 0 : i32
    %c0_i32_1 = arith.constant 0 : i32
    return %c0_i32, %c0_i32_0 : i32, i32
  }
  func.func @transform_5(%arg0: i32) -> (i32, i32) {
    %c0_i32 = arith.constant 0 : i32
    %c0_i32_0 = arith.constant 0 : i32
    %c0_i32_1 = arith.constant 0 : i32
    return %c0_i32, %c0_i32_0 : i32, i32
  }
  func.func @transform_6(%arg0: i32) -> (i32, i32) {
    %c0_i32 = arith.constant 0 : i32
    %c0_i32_0 = arith.constant 0 : i32
    return %c0_i32, %arg0 : i32, i32
  }
}

</mosaic_0001>

<bundles_post_ra>
// kernel: tpu_custom_call.1
= control target key start
LH: loop header
LB: loop body
LE: loop exit
PB: predicated region body
PF: predicated region fallthrough
CT: control target
= control target key end

     0   :  { %11 = vsyncpa [#allocation4], 0  ;;  %s2507_s0 = inlined_call_operand.vmem [shape: f32[8], index: 0, kind: input, shape index: {}]   ;;  %s2508_s1 = inlined_call_operand.vmem [shape: f32[8,512], index: 1, kind: input, shape index: {}]   ;;  %s2509_s2 = inlined_call_operand.vmem [shape: bf16[64,8], index: 2, kind: input, shape index: {}]   ;;  %s2510_s3 = inlined_call_operand.vmem [shape: bf16[64,128], index: 3, kind: input, shape index: {}]   ;;  %s2511_s4 = inlined_call_operand.vmem [shape: bf16[8,64], index: 4, kind: input, shape index: {}]   ;;  %s2512_s5 = inlined_call_operand.vmem [shape: f32[64,8], index: 5, kind: input, shape index: {}]   ;;  %s2513_s6 = inlined_call_operand.hbm [shape: f32[8,512], index: 6, kind: output, shape index: {}]  }
   0x1   :  { %12 = vsyncpa [#allocation3], 0  ;;  %s19_s23 = sshll.u32 %s2507_s0, 4  ;;  %s20_s23 = int_to_ptr.vmem [resolvable:$true] %s19_s23 }
   0x2   :  { %s1661_s24 = scalar_lea.vmem %s20_s23, 16  ;;  %p1666_p1 = scmp.lt.s32.totalorder %s20_s23, %s20_s23 }
   0x3   :  { %p1662_p0 = scmp.ne.s32.totalorder %s20_s23, %s1661_s24  ;;  %p1667_p2 = scmp.lt.s32.totalorder %s1661_s24, %s1661_s24 }
   0x5   :  { %p1668_p3 = por %p1667_p2, %p1666_p1 }
   0x7   :  { %p1669_p4 = pnand %p1668_p3, %p1662_p0 }
   0x9   :  { %1672 = shalt.err (!%p1669_p4)
}
   0xa   :  { %s1699_s25 = smov [#allocation2]  }
   0xb   :  { %22 = dma.vmem_to_smem %s20_s23, 16, %s1699_s25, [#allocation4]  }
   0xc   :  { %1695 = dma.done.wait [#allocation4], 16  }
   0xd   :  { %1696 = vsyncadd [#allocation4], 4294967280 }
   0xe   :  { %36 = sfence }
   0xf   :  { %v44_v0 = vld [vmem:[%s2508_s1 + $0x8] sm:$0xff]  ;;  %vm140_vm0 = vcmask 1043456   ;;  %v46_v1 = vld [vmem:[%s2508_s1 + $0x18] sm:$0xff]  ;;  %v43_v2 = vld [vmem:[%s2508_s1] sm:$0xff]  ;;  %v2514_v6 = vmov 0   ;;  %vm127_vm1 = vcmask 64512  }
  0x10   :  { %v64_v3 = vpack.c.bf16 %v44_v0, %v44_v0  ;;  %v66_v4 = vpack.c.bf16 %v46_v1, %v46_v1  ;;  %v45_v5 = vld [vmem:[%s2508_s1 + $0x10] sm:$0xff]  ;;  %185 = vmatprep.mubr.bf16.mxu0 %v2514_v6  ;;  %258 = vmatprep.mubr.bf16.mxu1 %v2514_v6  ;;  %v63_v7 = vpack.c.bf16 %v43_v2, %v43_v2  ;;  %v1640_v10 = vld [vmem:[%s2509_s2] sm:$0xff]   ;;  %v1778_v13 = vld [vmem:[%s2512_s5 + $0x8] sm:$0xff]  ;;  %v1701_v23 = vmov 1   ;;  %s1702_s11 = smov 64   ;;  %s2276_s25 = sld [smem:[#allocation2]] }
  0x11   :  { %1633 = vset.pattern.permute.xlu0 %v2514_v6  ;;  %1634 = vset.pattern.permute.xlu1 %v2514_v6  ;;  %v65_v9 = vpack.c.bf16 %v45_v5, %v45_v5  ;;  %v1770_v12 = vld [vmem:[%s2512_s5] sm:$0xff]  ;;  %v1783_v14 = vld [vmem:[%s2512_s5 + $0x10] sm:$0xff]  ;;  %v1641_v15 = vld [vmem:[%s2509_s2 + $0x8] sm:$0xff]   ;;  %s2278_s26 = sld [smem:[#allocation2 + $0x2]]  ;;  %s2284_s27 = sld [smem:[#allocation2 + $0x3]] }
  0x12   :  { %1594 = vmatprep.subr.msk.bf16.mxu0 %vm140_vm0, %v64_v3  ;;  %1599 = vmatprep.subr.msk.bf16.mxu1 %vm140_vm0, %v66_v4  ;;  %v142_v8 = vsel %vm140_vm0, %v63_v7, 0  ;;  %v1794_v16 = vld [vmem:[%s2512_s5 + $0x20] sm:$0xff]  ;;  %v1799_v17 = vld [vmem:[%s2512_s5 + $0x18] sm:$0xff]  ;;  %v1806_v18 = vld [vmem:[%s2512_s5 + $0x28] sm:$0xff]  ;;  %s2290_s28 = sld [smem:[#allocation2 + $0x4]]  ;;  %s1705_s0 = smov [#allocation5]  }
  0x13   :  { %154 = vmatpush1.bf16.msra.mxu0 %v142_v8  ;;  %v148_v11 = vsel %vm140_vm0, %v65_v9, 0  ;;  %69 = vperm.xlu0 %1633, %v1770_v12   ;;  %v1814_v19 = vld [vmem:[%s2512_s5 + $0x30] sm:$0xff]  ;;  %v1822_v20 = vld [vmem:[%s2512_s5 + $0x38] sm:$0xff]  ;;  %v1851_v24 = vld [vmem:[%s2510_s3] sm:$0xff]   ;;  %s1577_s29 = sshll.u32 %s1705_s0, 4  ;;  %s1578_s29 = int_to_ptr.vmem [resolvable:$true] %s1577_s29 }
  0x14   :  { %227 = vmatpush1.bf16.msra.mxu1 %v148_v11  ;;  %79 = vperm.xlu1 %1634, %v1783_v14   ;;  %v1642_v21 = vld [vmem:[%s2509_s2 + $0x10] sm:$0xff]   ;;  %v1643_v22 = vld [vmem:[%s2509_s2 + $0x18] sm:$0xff]   ;;  %v1856_v25 = vld [vmem:[%s2510_s3 + $0x8] sm:$0xff]   ;;  %s1673_s30 = scalar_lea.vmem %s1578_s29, 512  ;;  %p1678_p6 = scmp.lt.s32.totalorder %s1578_s29, %s1578_s29 }
  0x15   :  { %v1863_v26 = vld [vmem:[%s2510_s3 + $0x10] sm:$0xff]   ;;  %v1868_v27 = vld [vmem:[%s2510_s3 + $0x18] sm:$0xff]   ;;  %p1674_p5 = scmp.ne.s32.totalorder %s1578_s29, %s1673_s30  ;;  %p1679_p7 = scmp.lt.s32.totalorder %s1673_s30, %s1673_s30 }
  0x16   :  { %1595 = vmatmul.mubr.msk.bf16.vlgmr.msra.gmra.mrb[0].mxu0 %vm127_vm1, %v1640_v10 }
  0x17   :  { %195 = vmatprep.mubr.bf16.mxu0 %v2514_v6  ;;  %1600 = vmatmul.mubr.msk.bf16.vlgmr.msra.gmra.mrb[0].mxu1 %vm127_vm1, %v1640_v10  ;;  %p1680_p8 = por %p1679_p7, %p1678_p6 }
  0x18   :  { %268 = vmatprep.mubr.bf16.mxu1 %v2514_v6  ;;  %74 = vperm.xlu0 %1633, %v1778_v13  }
  0x19   :  { %84 = vperm.xlu1 %1634, %v1799_v17   ;;  %p1681_p9 = pnand %p1680_p8, %p1674_p5 }
  0x1c   :  { %89 = vperm.xlu0 %1633, %v1794_v16  }
  0x1d   :  { %94 = vperm.xlu1 %1634, %v1806_v18  }
  0x1e   :  { %1596 = vmatmul.mubr.msk.bf16.gmra.mrb[4].mxu0 %vm127_vm1, %v1641_v15 }
  0x1f   :  { %205 = vmatprep.mubr.bf16.mxu0 %v2514_v6  ;;  %1601 = vmatmul.mubr.msk.bf16.gmra.mrb[4].mxu1 %vm127_vm1, %v1641_v15 }
  0x20   :  { %278 = vmatprep.mubr.bf16.mxu1 %v2514_v6  ;;  %99 = vperm.xlu0 %1633, %v1814_v19  }
  0x21   :  { %104 = vperm.xlu1 %1634, %v1822_v20  }
  0x24   :  { %1635 = vset.pattern.permute.xlu0 %v1701_v23 }
  0x25   :  { %1636 = vset.pattern.permute.xlu1 %v1701_v23  ;;  %420 = vperm.xlu0 %1635, %v1770_v12  }
  0x26   :  { %1597 = vmatmul.mubr.msk.bf16.gmra.mrb[8].mxu0 %vm127_vm1, %v1642_v21  ;;  %424 = vperm.xlu1 %1636, %v1778_v13  }
  0x27   :  { %215 = vmatprep.mubr.bf16.mxu0 %v2514_v6  ;;  %1602 = vmatmul.mubr.msk.bf16.gmra.mrb[8].mxu1 %vm127_vm1, %v1642_v21 }
  0x28   :  { %288 = vmatprep.mubr.bf16.mxu1 %v2514_v6 }
  0x29   :  { %432 = vperm.xlu0 %1635, %v1799_v17  }
  0x2a   :  { %428 = vperm.xlu1 %1636, %v1783_v14  }
  0x2d   :  { %440 = vperm.xlu0 %1635, %v1806_v18  }
  0x2e   :  { %1598 = vmatmul.mubr.msk.bf16.gmra.mrb[12].mxu0 %vm127_vm1, %v1643_v22  ;;  %436 = vperm.xlu1 %1636, %v1794_v16  }
  0x2f   :  { %516 = vmatprep.mubr.bf16.mxu0 %v2514_v6  ;;  %1603 = vmatmul.mubr.msk.bf16.gmra.mrb[12].mxu1 %vm127_vm1, %v1643_v22 }
  0x30   :  { %589 = vmatprep.mubr.bf16.mxu1 %v2514_v6 }
  0x31   :  { %448 = vperm.xlu0 %1635, %v1822_v20  }
  0x32   :  { %444 = vperm.xlu1 %1636, %v1814_v19  }
  0x35   :  { %840 = vrot.lane.b32.xlu0 %v1856_v25, %s1702_s11 }
  0x36   :  { %838 = vrot.lane.b32.xlu1 %v1851_v24, %s1702_s11 }
  0x39   :  { %844 = vrot.lane.b32.xlu0 %v1868_v27, %s1702_s11 }
  0x3a   :  { %842 = vrot.lane.b32.xlu1 %v1863_v26, %s1702_s11 }
  0x92   :  { %v70_v28 = vpop.permute.xlu0 %69 }
  0x93   :  { %v80_v31 = vpop.permute.xlu1 %79 }
  0x97   :  { %v75_v29 = vpop.permute.xlu0 %74 }
  0x98   :  { %v85_v53 = vpop.permute.xlu1 %84 }
  0xe9   :  { %v187_v30 = vpop.f32.mrb[0].mxu0 }
  0xea   :  { %v189_v32 = vpop.f32.mrb[1].mxu0  ;;  %v260_v33 = vpop.f32.mrb[0].mxu1  ;;  %v188_v36 = vadd.f32 %v187_v30, %v70_v28 }
  0xeb   :  { %v190_v34 = vadd.f32 %v189_v32, %v70_v28  ;;  %v191_v35 = vpop.f32.mrb[2].mxu0  ;;  %v262_v37 = vpop.f32.mrb[1].mxu1  ;;  %v261_v40 = vadd.f32 %v260_v33, %v70_v28 }
  0xec   :  { %v192_v38 = vadd.f32 %v191_v35, %v75_v29  ;;  %v193_v39 = vpop.f32.mrb[3].mxu0  ;;  %v264_v42 = vpop.f32.mrb[2].mxu1  ;;  %v263_v44 = vadd.f32 %v262_v37, %v70_v28  ;;  %vm299_vm4 = vcmp.ge.f32.partialorder %v188_v36, 0.0  ;;  %v331_v47 = vmul.f32 0.01, %v188_v36 }
  0xed   :  { %v332_v41 = vmul.f32 0.01, %v190_v34  ;;  %v194_v43 = vadd.f32 %v193_v39, %v75_v29  ;;  %vm300_vm2 = vcmp.ge.f32.partialorder %v190_v34, 0.0  ;;  %v266_v45 = vpop.f32.mrb[3].mxu1  ;;  %vm301_vm6 = vcmp.ge.f32.partialorder %v261_v40, 0.0 }
  0xee   :  { %vm303_vm3 = vcmp.ge.f32.partialorder %v192_v38, 0.0  ;;  %v335_v46 = vmul.f32 0.01, %v192_v38  ;;  %v333_v49 = vmul.f32 0.01, %v261_v40  ;;  %v267_v51 = vadd.f32 %v266_v45, %v75_v29 }
  0xef   :  { %vm304_vm5 = vcmp.ge.f32.partialorder %v194_v43, 0.0  ;;  %v336_v48 = vmul.f32 0.01, %v194_v43  ;;  %v1872_v50 = vsel %vm300_vm2, %v190_v34, %v332_v41  ;;  %v334_v54 = vmul.f32 0.01, %v263_v44 }
  0xf0   :  { %v1874_v55 = vsel %vm303_vm3, %v192_v38, %v335_v46  ;;  %v265_v56 = vadd.f32 %v264_v42, %v75_v29  ;;  %vm302_vm7 = vcmp.ge.f32.partialorder %v263_v44, 0.0  ;;  %vm306_vm8 = vcmp.ge.f32.partialorder %v267_v51, 0.0 }
  0xf1   :  { %v197_v52 = vpop.f32.mrb[4].mxu0  ;;  %v1876_v57 = vsel %vm304_vm5, %v194_v43, %v336_v48  ;;  %v338_v59 = vmul.f32 0.01, %v267_v51  ;;  %v1879_v63 = vsel %vm299_vm4, %v188_v36, %v331_v47  ;;  %v1884_v5 = vsel %vm301_vm6, %v261_v40, %v333_v49 }
  0xf2   :  { %v199_v58 = vpop.f32.mrb[5].mxu0  ;;  %v198_v60 = vadd.f32 %v197_v52, %v80_v31  ;;  %v270_v61 = vpop.f32.mrb[4].mxu1  ;;  %v404_v4 = vpack.c.bf16 %v1876_v57, %v1872_v50  ;;  %v403_v7 = vpack.c.bf16 %v1874_v55, %v1879_v63  ;;  %v1889_v10 = vsel %vm302_vm7, %v263_v44, %v334_v54 }
  0xf3   :  { %v201_v62 = vpop.f32.mrb[6].mxu0  ;;  %v271_v0 = vadd.f32 %v270_v61, %v80_v31  ;;  %v272_v1 = vpop.f32.mrb[5].mxu1  ;;  %v200_v8 = vadd.f32 %v199_v58, %v80_v31  ;;  %vm305_vm9 = vcmp.ge.f32.partialorder %v265_v56, 0.0  ;;  %v337_v11 = vmul.f32 0.01, %v265_v56 }
  0xf4   :  { %v202_v2 = vadd.f32 %v201_v62, %v85_v53  ;;  %v203_v3 = vpop.f32.mrb[7].mxu0  ;;  %v274_v9 = vpop.f32.mrb[6].mxu1  ;;  %v1892_v15 = vsel %vm306_vm8, %v267_v51, %v338_v59  ;;  %484 = vmatprep.subr.bf16.mxu0 %v404_v4  ;;  %vm307_vm10 = vcmp.ge.f32.partialorder %v198_v60, 0.0  ;;  %v339_v21 = vmul.f32 0.01, %v198_v60 }
  0xf5   :  { %v273_v22 = vadd.f32 %v272_v1, %v80_v31  ;;  %v276_v28 = vpop.f32.mrb[7].mxu1  ;;  %485 = vmatpush1.bf16.msra.mxu0 %v403_v7  ;;  %vm309_vm11 = vcmp.ge.f32.partialorder %v271_v0, 0.0  ;;  %v275_v29 = vadd.f32 %v274_v9, %v85_v53  ;;  %v204_v30 = vadd.f32 %v203_v3, %v85_v53  ;;  %v90_v31 = vpop.permute.xlu0 %89 }
  0xf6   :  { %v343_v23 = vmul.f32 0.01, %v202_v2  ;;  %vm311_vm12 = vcmp.ge.f32.partialorder %v202_v2, 0.0  ;;  %v341_v32 = vmul.f32 0.01, %v271_v0  ;;  %vm308_vm13 = vcmp.ge.f32.partialorder %v200_v8, 0.0 }
  0xf7   :  { %v340_v33 = vmul.f32 0.01, %v200_v8  ;;  %v277_v34 = vadd.f32 %v276_v28, %v85_v53  ;;  %v1895_v36 = vsel %vm305_vm9, %v265_v56, %v337_v11  ;;  %v342_v37 = vmul.f32 0.01, %v273_v22  ;;  %v95_v56 = vpop.permute.xlu1 %94 }
  0xf8   :  { %vm313_vm14 = vcmp.ge.f32.partialorder %v275_v29, 0.0  ;;  %v345_v38 = vmul.f32 0.01, %v275_v29  ;;  %vm310_vm15 = vcmp.ge.f32.partialorder %v273_v22, 0.0  ;;  %v1897_v40 = vsel %vm311_vm12, %v202_v2, %v343_v23 }
  0xf9   :  { %v207_v35 = vpop.f32.mrb[8].mxu0  ;;  %vm312_vm0 = vcmp.ge.f32.partialorder %v204_v30, 0.0  ;;  %v344_v41 = vmul.f32 0.01, %v204_v30  ;;  %v346_v44 = vmul.f32 0.01, %v277_v34  ;;  %v406_v45 = vpack.c.bf16 %v1892_v15, %v1889_v10  ;;  %v100_v23 = vpop.permute.xlu0 %99 }
  0xfa   :  { %v209_v39 = vpop.f32.mrb[9].mxu0  ;;  %v280_v42 = vpop.f32.mrb[8].mxu1  ;;  %v1899_v43 = vsel %vm313_vm14, %v275_v29, %v345_v38  ;;  %v208_v46 = vadd.f32 %v207_v35, %v90_v31  ;;  %v405_v49 = vpack.c.bf16 %v1895_v36, %v1884_v5  ;;  %v1906_v51 = vsel %vm307_vm10, %v198_v60, %v339_v21 }
  0xfb   :  { %v282_v47 = vpop.f32.mrb[9].mxu1  ;;  %v211_v48 = vpop.f32.mrb[10].mxu0  ;;  %vm314_vm1 = vcmp.ge.f32.partialorder %v277_v34, 0.0  ;;  %v281_v52 = vadd.f32 %v280_v42, %v90_v31  ;;  %v1909_v58 = vsel %vm309_vm11, %v271_v0, %v341_v32  ;;  %v1912_v59 = vsel %vm308_vm13, %v200_v8, %v340_v33  ;;  %557 = vmatprep.subr.bf16.mxu1 %v406_v45 }
  0xfc   :  { %v284_v53 = vpop.f32.mrb[10].mxu1  ;;  %v213_v54 = vpop.f32.mrb[11].mxu0  ;;  %v1915_v61 = vsel %vm310_vm15, %v273_v22, %v342_v37  ;;  %v407_v62 = vpack.c.bf16 %v1897_v40, %v1906_v51  ;;  %v409_v60 = vpack.c.bf16 %v1899_v43, %v1909_v58  ;;  %v1922_v1 = vsel %vm312_vm0, %v204_v30, %v344_v41  ;;  %558 = vmatpush1.bf16.msra.mxu1 %v405_v49 }
  0xfd   :  { %v210_v2 = vadd.f32 %v209_v39, %v90_v31  ;;  %v212_v0 = vadd.f32 %v211_v48, %v95_v56  ;;  %v286_v3 = vpop.f32.mrb[11].mxu1  ;;  %v1925_v4 = vsel %vm314_vm1, %v277_v34, %v346_v44  ;;  %v347_v7 = vmul.f32 0.01, %v208_v46 }
  0xfe   :  { %v283_v8 = vadd.f32 %v282_v47, %v90_v31  ;;  %v285_v9 = vadd.f32 %v284_v53, %v95_v56  ;;  %vm315_vm2 = vcmp.ge.f32.partialorder %v208_v46, 0.0  ;;  %vm317_vm3 = vcmp.ge.f32.partialorder %v281_v52, 0.0  ;;  %v105_v53 = vpop.permute.xlu1 %104 }
  0xff   :  { %v349_v11 = vmul.f32 0.01, %v281_v52  ;;  %v214_v21 = vadd.f32 %v213_v54, %v95_v56  ;;  %vm319_vm4 = vcmp.ge.f32.partialorder %v212_v0, 0.0  ;;  %v351_v28 = vmul.f32 0.01, %v212_v0 }
 0x100   :  { %vm321_vm5 = vcmp.ge.f32.partialorder %v285_v9, 0.0  ;;  %v353_v29 = vmul.f32 0.01, %v285_v9  ;;  %vm316_vm6 = vcmp.ge.f32.partialorder %v210_v2, 0.0  ;;  %v348_v30 = vmul.f32 0.01, %v210_v2 }
 0x101   :  { %v217_v22 = vpop.f32.mrb[12].mxu0  ;;  %v287_v32 = vadd.f32 %v286_v3, %v95_v56  ;;  %v408_v33 = vpack.c.bf16 %v1922_v1, %v1912_v59  ;;  %v1930_v37 = vsel %vm315_vm2, %v208_v46, %v347_v7  ;;  %vm318_vm7 = vcmp.ge.f32.partialorder %v283_v8, 0.0 }
 0x102   :  { %v290_v34 = vpop.f32.mrb[12].mxu1  ;;  %v219_v35 = vpop.f32.mrb[13].mxu0  ;;  %v350_v38 = vmul.f32 0.01, %v283_v8  ;;  %v410_v39 = vpack.c.bf16 %v1925_v4, %v1915_v61  ;;  %v1935_v42 = vsel %vm319_vm4, %v212_v0, %v351_v28  ;;  %v1937_v44 = vsel %vm321_vm5, %v285_v9, %v353_v29 }
 0x103   :  { %v292_v31 = vpop.f32.mrb[13].mxu1  ;;  %v221_v41 = vpop.f32.mrb[14].mxu0  ;;  %v352_v45 = vmul.f32 0.01, %v214_v21  ;;  %486 = vmatprep.subr.bf16.mxu0 %v408_v33  ;;  %v218_v47 = vadd.f32 %v217_v22, %v100_v23  ;;  %v1940_v46 = vsel %vm317_vm3, %v281_v52, %v349_v11  ;;  %vm320_vm8 = vcmp.ge.f32.partialorder %v214_v21, 0.0 }
 0x104   :  { %v294_v48 = vpop.f32.mrb[14].mxu1  ;;  %v223_v49 = vpop.f32.mrb[15].mxu0  ;;  %vm322_vm9 = vcmp.ge.f32.partialorder %v287_v32, 0.0  ;;  %v354_v54 = vmul.f32 0.01, %v287_v32  ;;  %559 = vmatprep.subr.bf16.mxu1 %v410_v39  ;;  %487 = vmatpush1.bf16.msra.mxu0 %v407_v62  ;;  %v220_v0 = vadd.f32 %v219_v35, %v100_v23  ;;  %v293_v3 = vadd.f32 %v292_v31, %v100_v23 }
 0x105   :  { %v296_v56 = vpop.f32.mrb[15].mxu1  ;;  %560 = vmatpush1.bf16.msra.mxu1 %v409_v60  ;;  %v222_v7 = vadd.f32 %v221_v41, %v105_v53  ;;  %v295_v9 = vadd.f32 %v294_v48, %v105_v53  ;;  %v1943_v28 = vsel %vm316_vm6, %v210_v2, %v348_v30  ;;  %v1946_v22 = vsel %vm318_vm7, %v283_v8, %v350_v38 }
 0x106   :  { %v411_v52 = vpack.c.bf16 %v1935_v42, %v1930_v37  ;;  %v413_v11 = vpack.c.bf16 %v1937_v44, %v1940_v46  ;;  %v1952_v29 = vsel %vm320_vm8, %v214_v21, %v352_v45  ;;  %v1954_v62 = vsel %vm322_vm9, %v287_v32, %v354_v54 }
 0x107   :  { %v355_v60 = vmul.f32 0.01, %v218_v47  ;;  %v291_v33 = vadd.f32 %v290_v34, %v100_v23  ;;  %vm323_vm10 = vcmp.ge.f32.partialorder %v218_v47, 0.0  ;;  %vm324_vm11 = vcmp.ge.f32.partialorder %v220_v0, 0.0 }
 0x108   :  { %v356_v35 = vmul.f32 0.01, %v220_v0  ;;  %v359_v2 = vmul.f32 0.01, %v222_v7  ;;  %v358_v30 = vmul.f32 0.01, %v293_v3  ;;  %v224_v38 = vadd.f32 %v223_v49, %v105_v53 }
 0x109   :  { %vm327_vm12 = vcmp.ge.f32.partialorder %v222_v7, 0.0  ;;  %v361_v8 = vmul.f32 0.01, %v295_v9  ;;  %vm329_vm13 = vcmp.ge.f32.partialorder %v295_v9, 0.0  ;;  %v297_v39 = vadd.f32 %v296_v56, %v105_v53 }
 0x10a   :  { %v412_v31 = vpack.c.bf16 %v1952_v29, %v1943_v28  ;;  %v414_v21 = vpack.c.bf16 %v1954_v62, %v1946_v22  ;;  %v357_v32 = vmul.f32 0.01, %v291_v33  ;;  %vm326_vm14 = vcmp.ge.f32.partialorder %v293_v3, 0.0 }
 0x10b   :  { %vm328_vm15 = vcmp.ge.f32.partialorder %v224_v38, 0.0  ;;  %v360_v23 = vmul.f32 0.01, %v224_v38  ;;  %vm325_vm0 = vcmp.ge.f32.partialorder %v291_v33, 0.0  ;;  %v1960_v34 = vsel %vm327_vm12, %v222_v7, %v359_v2 }
 0x10c   :  { %vm330_vm1 = vcmp.ge.f32.partialorder %v297_v39, 0.0  ;;  %v362_v41 = vmul.f32 0.01, %v297_v39  ;;  %488 = vmatprep.subr.bf16.mxu0 %v412_v31  ;;  %561 = vmatprep.subr.bf16.mxu1 %v414_v21  ;;  %v1963_v45 = vsel %vm324_vm11, %v220_v0, %v356_v35  ;;  %v1965_v48 = vsel %vm329_vm13, %v295_v9, %v361_v8 }
 0x10d   :  { %v1967_v49 = vsel %vm328_vm15, %v224_v38, %v360_v23  ;;  %489 = vmatpush1.bf16.msra.mxu0 %v411_v52  ;;  %562 = vmatpush1.bf16.msra.mxu1 %v413_v11  ;;  %v1970_v53 = vsel %vm323_vm10, %v218_v47, %v355_v60  ;;  %v1972_v54 = vsel %vm326_vm14, %v293_v3, %v358_v30  ;;  %vm471_vm2 = vcmask 523264  }
 0x10e   :  { %v1974_v56 = vsel %vm330_vm1, %v297_v39, %v362_v41  ;;  %v416_v7 = vpack.c.bf16 %v1967_v49, %v1963_v45  ;;  %v1978_v2 = vsel %vm325_vm0, %v291_v33, %v357_v32  ;;  %v415_v0 = vpack.c.bf16 %v1960_v34, %v1970_v53 }
 0x10f   :  { %v418_v9 = vpack.c.bf16 %v1974_v56, %v1972_v54  ;;  %v417_v52 = vpack.c.bf16 %v1965_v48, %v1978_v2 }
 0x110   :  { %490 = vmatprep.subr.bf16.mxu0 %v416_v7 }
 0x111   :  { %563 = vmatprep.subr.bf16.mxu1 %v418_v9  ;;  %491 = vmatpush1.bf16.msra.mxu0 %v415_v0 }
 0x112   :  { %564 = vmatpush1.bf16.msra.mxu1 %v417_v52 }
 0x114   :  { %1608 = vmatmul.mubr.msk.bf16.vlgmr.msra.gmra.mrb[16].mxu0 %vm471_vm2, %v1851_v24 }
 0x115   :  { %1612 = vmatmul.mubr.msk.bf16.vlgmr.msra.gmra.mrb[16].mxu1 %vm471_vm2, %v1851_v24  ;;  %526 = vmatprep.mubr.bf16.mxu0 %v2514_v6  ;;  %v1703_v24 = vmov 2  }
 0x116   :  { %599 = vmatprep.mubr.bf16.mxu1 %v2514_v6  ;;  %1637 = vset.pattern.permute.xlu1 %v1703_v24 }
 0x117   :  { %1638 = vset.pattern.permute.xlu0 %v1703_v24  ;;  %807 = vperm.xlu1 %1637, %v1770_v12  }
 0x118   :  { %811 = vperm.xlu0 %1638, %v1778_v13  }
 0x11b   :  { %815 = vperm.xlu1 %1637, %v1783_v14  }
 0x11c   :  { %1609 = vmatmul.mubr.msk.bf16.gmra.mrb[20].mxu0 %vm471_vm2, %v1856_v25  ;;  %823 = vperm.xlu0 %1638, %v1794_v16  }
 0x11d   :  { %1613 = vmatmul.mubr.msk.bf16.gmra.mrb[20].mxu1 %vm471_vm2, %v1856_v25  ;;  %536 = vmatprep.mubr.bf16.mxu0 %v2514_v6  ;;  %v421_v25 = vpop.permute.xlu0 %420 }
 0x11e   :  { %609 = vmatprep.mubr.bf16.mxu1 %v2514_v6 }
 0x11f   :  { %819 = vperm.xlu1 %1637, %v1799_v17  }
 0x120   :  { %831 = vperm.xlu0 %1638, %v1814_v19  }
 0x123   :  { %827 = vperm.xlu1 %1637, %v1806_v18  }
 0x124   :  { %1610 = vmatmul.mubr.msk.bf16.gmra.mrb[24].mxu0 %vm471_vm2, %v1863_v26 }
 0x125   :  { %1614 = vmatmul.mubr.msk.bf16.gmra.mrb[24].mxu1 %vm471_vm2, %v1863_v26  ;;  %546 = vmatprep.mubr.bf16.mxu0 %v2514_v6  ;;  %v425_v26 = vpop.permute.xlu1 %424 }
 0x126   :  { %619 = vmatprep.mubr.bf16.mxu1 %v2514_v6 }
 0x127   :  { %835 = vperm.xlu1 %1637, %v1822_v20  }
 0x129   :  { %v429_v23 = vpop.permute.xlu1 %428 }
 0x12c   :  { %1611 = vmatmul.mubr.msk.bf16.gmra.mrb[28].mxu0 %vm471_vm2, %v1868_v27 }
 0x12d   :  { %1615 = vmatmul.mubr.msk.bf16.gmra.mrb[28].mxu1 %vm471_vm2, %v1868_v27  ;;  %890 = vmatprep.mubr.bf16.mxu0 %v2514_v6 }
 0x12e   :  { %963 = vmatprep.mubr.bf16.mxu1 %v2514_v6 }
 0x1e7   :  { %v518_v27 = vpop.f32.mrb[16].mxu0 }
 0x1e8   :  { %v519_v47 = vadd.f32 %v518_v27, %v421_v25  ;;  %v591_v3 = vpop.f32.mrb[16].mxu1  ;;  %v520_v12 = vpop.f32.mrb[17].mxu0 }
 0x1e9   :  { %v592_v11 = vadd.f32 %v591_v3, %v421_v25  ;;  %v521_v13 = vadd.f32 %v520_v12, %v421_v25  ;;  %v593_v60 = vpop.f32.mrb[17].mxu1  ;;  %v522_v14 = vpop.f32.mrb[18].mxu0 }
 0x1ea   :  { %vm630_vm3 = vcmp.ge.f32.partialorder %v519_v47, 0.0  ;;  %v662_v16 = vmul.f32 0.01, %v519_v47  ;;  %v594_v33 = vadd.f32 %v593_v60, %v421_v25  ;;  %v523_v17 = vadd.f32 %v522_v14, %v425_v26  ;;  %v595_v35 = vpop.f32.mrb[18].mxu1  ;;  %v524_v19 = vpop.f32.mrb[19].mxu0 }
 0x1eb   :  { %vm632_vm4 = vcmp.ge.f32.partialorder %v592_v11, 0.0  ;;  %v664_v18 = vmul.f32 0.01, %v592_v11  ;;  %vm631_vm5 = vcmp.ge.f32.partialorder %v521_v13, 0.0  ;;  %v663_v20 = vmul.f32 0.01, %v521_v13 }
 0x1ec   :  { %v694_v30 = vsel %vm630_vm3, %v519_v47, %v662_v16  ;;  %vm633_vm6 = vcmp.ge.f32.partialorder %v594_v33, 0.0  ;;  %v665_v8 = vmul.f32 0.01, %v594_v33  ;;  %vm634_vm7 = vcmp.ge.f32.partialorder %v523_v17, 0.0  ;;  %v597_v38 = vpop.f32.mrb[19].mxu1 }
 0x1ed   :  { %v726_v39 = vmul.f32 %v694_v30, %v1879_v63  ;;  %v696_v31 = vsel %vm632_vm4, %v592_v11, %v664_v18  ;;  %v695_v21 = vsel %vm631_vm5, %v521_v13, %v663_v20  ;;  %v666_v32 = vmul.f32 0.01, %v523_v17 }
 0x1ee   :  { %v728_v41 = vmul.f32 %v696_v31, %v1884_v5  ;;  %v697_v7 = vsel %vm633_vm6, %v594_v33, %v665_v8  ;;  %v596_v0 = vadd.f32 %v595_v35, %v425_v26  ;;  %v2024_v52 = vmul.f32 %v695_v21, %v1872_v50 }
 0x1ef   :  { %v2021_v9 = vadd.f32 %v726_v39, %v1879_v63  ;;  %v698_v24 = vsel %vm634_vm7, %v523_v17, %v666_v32  ;;  %v525_v25 = vadd.f32 %v524_v19, %v425_v26  ;;  %v528_v27 = vpop.f32.mrb[20].mxu0  ;;  %v2027_v47 = vmul.f32 %v697_v7, %v1889_v10  ;;  %v433_v7 = vpop.permute.xlu0 %432 }
 0x1f0   :  { %v730_v3 = vmul.f32 %v698_v24, %v1874_v55  ;;  %vm636_vm8 = vcmp.ge.f32.partialorder %v596_v0, 0.0  ;;  %v668_v12 = vmul.f32 0.01, %v596_v0  ;;  %v601_v11 = vpop.f32.mrb[20].mxu1  ;;  %v530_v13 = vpop.f32.mrb[21].mxu0  ;;  %v598_v14 = vadd.f32 %v597_v38, %v425_v26 }
 0x1f1   :  { %vm635_vm9 = vcmp.ge.f32.partialorder %v525_v25, 0.0  ;;  %v667_v60 = vmul.f32 0.01, %v525_v25  ;;  %v529_v63 = vadd.f32 %v528_v27, %v429_v23  ;;  %v603_v16 = vpop.f32.mrb[21].mxu1  ;;  %v532_v33 = vpop.f32.mrb[22].mxu0  ;;  %v2031_v35 = vadd.f32 %v728_v41, %v1884_v5 }
 0x1f2   :  { %v700_v17 = vsel %vm636_vm8, %v596_v0, %v668_v12  ;;  %v602_v19 = vadd.f32 %v601_v11, %v429_v23  ;;  %v531_v18 = vadd.f32 %v530_v13, %v429_v23  ;;  %v605_v20 = vpop.f32.mrb[22].mxu1  ;;  %v534_v30 = vpop.f32.mrb[23].mxu0  ;;  %vm637_vm10 = vcmp.ge.f32.partialorder %v598_v14, 0.0 }
 0x1f3   :  { %v732_v8 = vmul.f32 %v700_v17, %v1895_v36  ;;  %v699_v39 = vsel %vm635_vm9, %v525_v25, %v667_v60  ;;  %v669_v31 = vmul.f32 0.01, %v598_v14  ;;  %v607_v21 = vpop.f32.mrb[23].mxu1  ;;  %v2035_v32 = vadd.f32 %v730_v3, %v1874_v55 }
 0x1f4   :  { %vm638_vm11 = vcmp.ge.f32.partialorder %v529_v63, 0.0  ;;  %v670_v26 = vmul.f32 0.01, %v529_v63  ;;  %vm640_vm12 = vcmp.ge.f32.partialorder %v602_v19, 0.0  ;;  %v731_v38 = vmul.f32 %v699_v39, %v1876_v57 }
 0x1f5   :  { %v2038_v5 = vadd.f32 %v732_v8, %v1895_v36  ;;  %v672_v41 = vmul.f32 0.01, %v602_v19  ;;  %vm639_vm13 = vcmp.ge.f32.partialorder %v531_v18, 0.0  ;;  %v701_v0 = vsel %vm637_vm10, %v598_v14, %v669_v31 }
 0x1f6   :  { %v702_v24 = vsel %vm638_vm11, %v529_v63, %v670_v26  ;;  %v671_v25 = vmul.f32 0.01, %v531_v18  ;;  %v604_v27 = vadd.f32 %v603_v16, %v429_v23  ;;  %v533_v55 = vadd.f32 %v532_v33, %v433_v7 }
 0x1f7   :  { %v734_v12 = vmul.f32 %v702_v24, %v1906_v51  ;;  %v704_v11 = vsel %vm640_vm12, %v602_v19, %v672_v41  ;;  %v606_v3 = vadd.f32 %v605_v20, %v433_v7  ;;  %v538_v13 = vpop.f32.mrb[24].mxu0  ;;  %v733_v6 = vmul.f32 %v701_v0, %v1892_v15 }
 0x1f8   :  { %v736_v60 = vmul.f32 %v704_v11, %v1909_v58  ;;  %v703_v17 = vsel %vm639_vm13, %v531_v18, %v671_v25  ;;  %vm641_vm14 = vcmp.ge.f32.partialorder %v604_v27, 0.0  ;;  %v673_v36 = vmul.f32 0.01, %v604_v27  ;;  %v611_v8 = vpop.f32.mrb[24].mxu1  ;;  %v540_v39 = vpop.f32.mrb[25].mxu0 }
 0x1f9   :  { %v2045_v14 = vadd.f32 %v734_v12, %v1906_v51  ;;  %vm642_vm15 = vcmp.ge.f32.partialorder %v533_v55, 0.0  ;;  %v674_v23 = vmul.f32 0.01, %v533_v55  ;;  %v613_v63 = vpop.f32.mrb[25].mxu1  ;;  %v542_v16 = vpop.f32.mrb[26].mxu0  ;;  %v2048_v33 = vmul.f32 %v703_v17, %v1912_v59 }
 0x1fa   :  { %v705_v19 = vsel %vm641_vm14, %v604_v27, %v673_v36  ;;  %vm644_vm0 = vcmp.ge.f32.partialorder %v606_v3, 0.0  ;;  %v676_v20 = vmul.f32 0.01, %v606_v3  ;;  %v615_v18 = vpop.f32.mrb[26].mxu1  ;;  %v2050_v31 = vpop.f32.mrb[27].mxu0  ;;  %v2053_v26 = vadd.f32 %v736_v60, %v1909_v58 }
 0x1fb   :  { %v706_v41 = vsel %vm642_vm15, %v533_v55, %v674_v23  ;;  %v535_v0 = vadd.f32 %v534_v30, %v433_v7  ;;  %v608_v51 = vadd.f32 %v607_v21, %v433_v7  ;;  %v2055_v24 = vpop.f32.mrb[27].mxu1  ;;  %v759_v11 = vadd.f32 %v2024_v52, %v1872_v50  ;;  %v437_v55 = vpop.permute.xlu1 %436 }
 0x1fc   :  { %v738_v25 = vmul.f32 %v706_v41, %v1897_v40  ;;  %v708_v12 = vsel %vm644_vm0, %v606_v3, %v676_v20  ;;  %v763_v27 = vadd.f32 %v731_v38, %v1876_v57  ;;  %v2062_v17 = vmul.f32 %v705_v19, %v1915_v61  ;;  %v441_v3 = vpop.permute.xlu0 %440 }
 0x1fd   :  { %v740_v36 = vmul.f32 %v708_v12, %v1899_v43  ;;  %vm643_vm1 = vcmp.ge.f32.partialorder %v535_v0, 0.0  ;;  %v675_v58 = vmul.f32 0.01, %v535_v0  ;;  %vm645_vm3 = vcmp.ge.f32.partialorder %v608_v51, 0.0 }
 0x1fe   :  { %v2066_v30 = vadd.f32 %v738_v25, %v1897_v40  ;;  %v677_v21 = vmul.f32 0.01, %v608_v51  ;;  %v791_v7 = vpack.c.bf16 %v763_v27, %v759_v11  ;;  %v761_v50 = vadd.f32 %v2027_v47, %v1889_v10 }
 0x1ff   :  { %v707_v60 = vsel %vm643_vm1, %v535_v0, %v675_v58  ;;  %v765_v57 = vadd.f32 %v733_v6, %v1892_v15  ;;  %v539_v52 = vadd.f32 %v538_v13, %v437_v55  ;;  %v2071_v38 = vpop.f32.mrb[28].mxu0  ;;  %v2074_v23 = vadd.f32 %v740_v36, %v1899_v43 }
 0x200   :  { %v739_v19 = vmul.f32 %v707_v60, %v1922_v1  ;;  %858 = vmatprep.subr.bf16.mxu0 %v791_v7  ;;  %v612_v40 = vadd.f32 %v611_v8, %v437_v55  ;;  %v790_v20 = vpack.c.bf16 %v2035_v32, %v2021_v9  ;;  %v621_v41 = vpop.f32.mrb[28].mxu1  ;;  %v2079_v0 = vpop.f32.mrb[29].mxu0  ;;  %v709_v10 = vsel %vm645_vm3, %v608_v51, %v677_v21 }
 0x201   :  { %v793_v47 = vpack.c.bf16 %v765_v57, %v761_v50  ;;  %vm646_vm4 = vcmp.ge.f32.partialorder %v539_v52, 0.0  ;;  %v678_v6 = vmul.f32 0.01, %v539_v52  ;;  %v2082_v15 = vpop.f32.mrb[29].mxu1  ;;  %v2084_v13 = vpop.f32.mrb[30].mxu0  ;;  %v792_v8 = vpack.c.bf16 %v2038_v5, %v2031_v35 }
 0x202   :  { %vm648_vm5 = vcmp.ge.f32.partialorder %v612_v40, 0.0  ;;  %v680_v43 = vmul.f32 0.01, %v612_v40  ;;  %859 = vmatpush1.bf16.msra.mxu0 %v790_v20  ;;  %v541_v25 = vadd.f32 %v540_v39, %v437_v55  ;;  %v2088_v9 = vpop.f32.mrb[30].mxu1  ;;  %v2090_v32 = vpop.f32.mrb[31].mxu0  ;;  %v614_v12 = vadd.f32 %v613_v63, %v437_v55 }
 0x203   :  { %931 = vmatprep.subr.bf16.mxu1 %v793_v47  ;;  %v710_v51 = vsel %vm646_vm4, %v539_v52, %v678_v6  ;;  %v543_v11 = vadd.f32 %v542_v16, %v441_v3  ;;  %v616_v27 = vadd.f32 %v615_v18, %v441_v3  ;;  %v2092_v36 = vpop.f32.mrb[31].mxu1  ;;  %v741_v39 = vmul.f32 %v709_v10, %v1925_v4 }
 0x204   :  { %v742_v58 = vmul.f32 %v710_v51, %v1930_v37  ;;  %v712_v21 = vsel %vm648_vm5, %v612_v40, %v680_v43  ;;  %932 = vmatpush1.bf16.msra.mxu1 %v792_v8  ;;  %vm647_vm6 = vcmp.ge.f32.partialorder %v541_v25, 0.0  ;;  %v679_v7 = vmul.f32 0.01, %v541_v25 }
 0x205   :  { %v744_v35 = vmul.f32 %v712_v21, %v1940_v46  ;;  %vm649_vm7 = vcmp.ge.f32.partialorder %v614_v12, 0.0  ;;  %v681_v5 = vmul.f32 0.01, %v614_v12  ;;  %vm650_vm8 = vcmp.ge.f32.partialorder %v543_v11, 0.0 }
 0x206   :  { %v711_v60 = vsel %vm647_vm6, %v541_v25, %v679_v7  ;;  %v682_v50 = vmul.f32 0.01, %v543_v11  ;;  %vm652_vm9 = vcmp.ge.f32.partialorder %v616_v27, 0.0  ;;  %v2098_v63 = vadd.f32 %v742_v58, %v1930_v37  ;;  %v445_v25 = vpop.permute.xlu1 %444  ;;  %v449_v7 = vpop.permute.xlu0 %448 }
 0x207   :  { %v2101_v16 = vadd.f32 %v744_v35, %v1940_v46  ;;  %v713_v18 = vsel %vm649_vm7, %v614_v12, %v681_v5  ;;  %v684_v55 = vmul.f32 0.01, %v616_v27  ;;  %v2104_v57 = vmul.f32 %v711_v60, %v1943_v28 }
 0x208   :  { %v714_v52 = vsel %vm650_vm8, %v543_v11, %v682_v50  ;;  %v545_v40 = vadd.f32 %v2050_v31, %v441_v3  ;;  %v618_v20 = vadd.f32 %v2055_v24, %v441_v3  ;;  %v767_v37 = vadd.f32 %v2048_v33, %v1912_v59 }
 0x209   :  { %v746_v10 = vmul.f32 %v714_v52, %v1935_v42  ;;  %v716_v47 = vsel %vm652_vm9, %v616_v27, %v684_v55  ;;  %v771_v6 = vadd.f32 %v739_v19, %v1922_v1  ;;  %v2113_v46 = vmul.f32 %v713_v18, %v1946_v22 }
 0x20a   :  { %v748_v43 = vmul.f32 %v716_v47, %v1937_v44  ;;  %vm651_vm10 = vcmp.ge.f32.partialorder %v545_v40, 0.0  ;;  %v683_v8 = vmul.f32 0.01, %v545_v40  ;;  %vm653_vm11 = vcmp.ge.f32.partialorder %v618_v20, 0.0 }
 0x20b   :  { %v2117_v31 = vadd.f32 %v746_v10, %v1935_v42  ;;  %v685_v24 = vmul.f32 0.01, %v618_v20  ;;  %v795_v3 = vpack.c.bf16 %v771_v6, %v767_v37  ;;  %v769_v59 = vadd.f32 %v2062_v17, %v1915_v61 }
 0x20c   :  { %v715_v51 = vsel %vm651_vm10, %v545_v40, %v683_v8  ;;  %v773_v1 = vadd.f32 %v741_v39, %v1925_v4  ;;  %v549_v33 = vadd.f32 %v2071_v38, %v445_v25  ;;  %v2124_v19 = vadd.f32 %v748_v43, %v1937_v44 }
 0x20d   :  { %v747_v12 = vmul.f32 %v715_v51, %v1952_v29  ;;  %860 = vmatprep.subr.bf16.mxu0 %v795_v3  ;;  %v622_v11 = vadd.f32 %v621_v41, %v445_v25  ;;  %v794_v42 = vpack.c.bf16 %v2066_v30, %v2045_v14  ;;  %v717_v27 = vsel %vm653_vm11, %v618_v20, %v685_v24 }
 0x20e   :  { %v797_v58 = vpack.c.bf16 %v773_v1, %v769_v59  ;;  %vm654_vm12 = vcmp.ge.f32.partialorder %v549_v33, 0.0  ;;  %v686_v21 = vmul.f32 0.01, %v549_v33  ;;  %v796_v4 = vpack.c.bf16 %v2074_v23, %v2053_v26 }
 0x20f   :  { %vm656_vm13 = vcmp.ge.f32.partialorder %v622_v11, 0.0  ;;  %v688_v61 = vmul.f32 0.01, %v622_v11  ;;  %861 = vmatpush1.bf16.msra.mxu0 %v794_v42  ;;  %v551_v44 = vadd.f32 %v2079_v0, %v445_v25  ;;  %v624_v38 = vadd.f32 %v2082_v15, %v445_v25 }
 0x210   :  { %933 = vmatprep.subr.bf16.mxu1 %v797_v58  ;;  %v718_v17 = vsel %vm654_vm12, %v549_v33, %v686_v21  ;;  %v553_v41 = vadd.f32 %v2084_v13, %v449_v7  ;;  %v626_v14 = vadd.f32 %v2088_v9, %v449_v7  ;;  %v749_v39 = vmul.f32 %v717_v27, %v1954_v62 }
 0x211   :  { %v750_v30 = vmul.f32 %v718_v17, %v1970_v53  ;;  %v720_v35 = vsel %vm656_vm13, %v622_v11, %v688_v61  ;;  %934 = vmatpush1.bf16.msra.mxu1 %v796_v4  ;;  %vm655_vm14 = vcmp.ge.f32.partialorder %v551_v44, 0.0  ;;  %v687_v5 = vmul.f32 0.01, %v551_v44 }
 0x212   :  { %vm657_vm15 = vcmp.ge.f32.partialorder %v624_v38, 0.0  ;;  %v689_v26 = vmul.f32 0.01, %v624_v38  ;;  %vm658_vm0 = vcmp.ge.f32.partialorder %v553_v41, 0.0  ;;  %v752_v23 = vmul.f32 %v720_v35, %v1978_v2 }
 0x213   :  { %v719_v0 = vsel %vm655_vm14, %v551_v44, %v687_v5  ;;  %v690_v60 = vmul.f32 0.01, %v553_v41  ;;  %vm660_vm1 = vcmp.ge.f32.partialorder %v626_v14, 0.0  ;;  %v782_v15 = vadd.f32 %v750_v30, %v1970_v53 }
 0x214   :  { %v751_v13 = vmul.f32 %v719_v0, %v1963_v45  ;;  %v721_v9 = vsel %vm657_vm15, %v624_v38, %v689_v26  ;;  %v692_v50 = vmul.f32 0.01, %v626_v14  ;;  %v555_v52 = vadd.f32 %v2090_v32, %v449_v7 }
 0x215   :  { %v753_v18 = vmul.f32 %v721_v9, %v1972_v54  ;;  %v722_v55 = vsel %vm658_vm0, %v553_v41, %v690_v60  ;;  %v628_v40 = vadd.f32 %v2092_v36, %v449_v7  ;;  %v775_v47 = vadd.f32 %v2104_v57, %v1943_v28 }
 0x216   :  { %v754_v20 = vmul.f32 %v722_v55, %v1960_v34  ;;  %v724_v10 = vsel %vm660_vm1, %v626_v14, %v692_v50  ;;  %v779_v37 = vadd.f32 %v747_v12, %v1952_v29  ;;  %vm659_vm3 = vcmp.ge.f32.partialorder %v555_v52, 0.0  ;;  %v1656_v12 = vld [vmem:[%s2512_s5] sm:$0xff] }
 0x217   :  { %v756_v53 = vmul.f32 %v724_v10, %v1965_v48  ;;  %v691_v6 = vmul.f32 0.01, %v555_v52  ;;  %vm661_vm4 = vcmp.ge.f32.partialorder %v628_v40, 0.0  ;;  %v693_v8 = vmul.f32 0.01, %v628_v40 }
 0x218   :  { %v786_v43 = vadd.f32 %v754_v20, %v1960_v34  ;;  %v799_v25 = vpack.c.bf16 %v779_v37, %v775_v47  ;;  %v777_v32 = vadd.f32 %v2113_v46, %v1946_v22  ;;  %v781_v3 = vadd.f32 %v749_v39, %v1954_v62 }
 0x219   :  { %v788_v36 = vadd.f32 %v756_v53, %v1965_v48  ;;  %v723_v24 = vsel %vm659_vm3, %v555_v52, %v691_v6  ;;  %v798_v28 = vpack.c.bf16 %v2117_v31, %v2098_v63  ;;  %v784_v29 = vadd.f32 %v752_v23, %v1978_v2 }
 0x21a   :  { %v755_v57 = vmul.f32 %v723_v24, %v1967_v49  ;;  %v725_v51 = vsel %vm661_vm4, %v628_v40, %v693_v8  ;;  %862 = vmatprep.subr.bf16.mxu0 %v799_v25  ;;  %v800_v34 = vpack.c.bf16 %v2124_v19, %v2101_v16  ;;  %v801_v22 = vpack.c.bf16 %v781_v3, %v777_v32  ;;  %v839_v16 = vpop.permute.xlu1 %838 }
 0x21b   :  { %v757_v59 = vmul.f32 %v725_v51, %v1974_v56  ;;  %863 = vmatpush1.bf16.msra.mxu0 %v798_v28  ;;  %v802_v48 = vpack.c.bf16 %v786_v43, %v782_v15  ;;  %v783_v46 = vadd.f32 %v751_v13, %v1963_v45  ;;  %v804_v1 = vpack.c.bf16 %v788_v36, %v784_v29 }
 0x21c   :  { %v787_v62 = vadd.f32 %v755_v57, %v1967_v49  ;;  %935 = vmatprep.subr.bf16.mxu1 %v801_v22  ;;  %v785_v2 = vadd.f32 %v753_v18, %v1972_v54  ;;  %v2516_v45 = vmov 0   ;;  %v841_v49 = vpop.permute.xlu0 %840  ;;  %v1704_v19 = vmov 3  }
 0x21d   :  { %v789_v63 = vadd.f32 %v757_v59, %v1974_v56  ;;  %936 = vmatpush1.bf16.msra.mxu1 %v800_v34  ;;  %1639 = vset.pattern.permute.xlu0 %v1704_v19 }
 0x21e   :  { %v803_v31 = vpack.c.bf16 %v787_v62, %v783_v46  ;;  %v843_v54 = vpop.permute.xlu1 %842  ;;  %1118 = vperm.xlu0 %1639, %v1656_v12  }
 0x21f   :  { %v805_v33 = vpack.c.bf16 %v789_v63, %v785_v2 }
 0x220   :  { %864 = vmatprep.subr.bf16.mxu0 %v803_v31  ;;  %v845_v56 = vpop.permute.xlu0 %844 }
 0x221   :  { %937 = vmatprep.subr.bf16.mxu1 %v805_v33  ;;  %865 = vmatpush1.bf16.msra.mxu0 %v802_v48 }
 0x222   :  { %938 = vmatpush1.bf16.msra.mxu1 %v804_v1  ;;  %v808_v11 = vpop.permute.xlu1 %807 }
 0x224   :  { %1616 = vmatmul.mubr.msk.bf16.vlgmr.msra.gmra.mrb[32].mxu0 %vm471_vm2, %v839_v16  ;;  %v812_v42 = vpop.permute.xlu0 %811 }
 0x225   :  { %1620 = vmatmul.mubr.msk.bf16.vlgmr.msra.gmra.mrb[32].mxu1 %vm471_vm2, %v839_v16  ;;  %900 = vmatprep.mubr.bf16.mxu0 %v2516_v45 }
 0x226   :  { %973 = vmatprep.mubr.bf16.mxu1 %v2516_v45  ;;  %v816_v27 = vpop.permute.xlu1 %815 }
 0x228   :  { %v824_v12 = vpop.permute.xlu0 %823 }
 0x22a   :  { %v820_v20 = vpop.permute.xlu1 %819 }
 0x22c   :  { %1617 = vmatmul.mubr.msk.bf16.gmra.mrb[36].mxu0 %vm471_vm2, %v841_v49 }
 0x22d   :  { %1621 = vmatmul.mubr.msk.bf16.gmra.mrb[36].mxu1 %vm471_vm2, %v841_v49  ;;  %910 = vmatprep.mubr.bf16.mxu0 %v2516_v45 }
 0x22e   :  { %983 = vmatprep.mubr.bf16.mxu1 %v2516_v45  ;;  %v828_v19 = vpop.permute.xlu1 %827 }
 0x234   :  { %1618 = vmatmul.mubr.msk.bf16.gmra.mrb[40].mxu0 %vm471_vm2, %v843_v54 }
 0x235   :  { %1622 = vmatmul.mubr.msk.bf16.gmra.mrb[40].mxu1 %vm471_vm2, %v843_v54  ;;  %920 = vmatprep.mubr.bf16.mxu0 %v2516_v45 }
 0x236   :  { %993 = vmatprep.mubr.bf16.mxu1 %v2516_v45 }
 0x23c   :  { %1619 = vmatmul.mubr.msk.bf16.gmra.mrb[44].mxu0 %vm471_vm2, %v845_v56 }
 0x23d   :  { %1623 = vmatmul.mubr.msk.bf16.gmra.mrb[44].mxu1 %vm471_vm2, %v845_v56  ;;  %1156 = vmatprep.mubr.bf16.mxu0 %v2516_v45 }
 0x23e   :  { %1197 = vmatprep.mubr.bf16.mxu1 %v2516_v45 }
 0x2f7   :  { %v892_v58 = vpop.f32.mrb[32].mxu0 }
 0x2f8   :  { %v893_v21 = vadd.f32 %v892_v58, %v808_v11  ;;  %v965_v7 = vpop.f32.mrb[32].mxu1  ;;  %v894_v61 = vpop.f32.mrb[33].mxu0 }
 0x2f9   :  { %v966_v4 = vadd.f32 %v965_v7, %v808_v11  ;;  %v895_v44 = vadd.f32 %v894_v61, %v808_v11  ;;  %v967_v17 = vpop.f32.mrb[33].mxu1  ;;  %v896_v38 = vpop.f32.mrb[34].mxu0 }
 0x2fa   :  { %v1036_v41 = vmul.f32 0.01, %v893_v21  ;;  %v968_v14 = vadd.f32 %v967_v17, %v808_v11  ;;  %v897_v30 = vadd.f32 %v896_v38, %v812_v42  ;;  %v969_v35 = vpop.f32.mrb[34].mxu1  ;;  %v898_v5 = vpop.f32.mrb[35].mxu0  ;;  %vm1004_vm5 = vcmp.ge.f32.partialorder %v893_v21, 0.0 }
 0x2fb   :  { %v1038_v39 = vmul.f32 0.01, %v966_v4  ;;  %vm1006_vm6 = vcmp.ge.f32.partialorder %v966_v4, 0.0  ;;  %vm1005_vm7 = vcmp.ge.f32.partialorder %v895_v44, 0.0  ;;  %v1037_v26 = vmul.f32 0.01, %v895_v44 }
 0x2fc   :  { %vm1008_vm8 = vcmp.ge.f32.partialorder %v897_v30, 0.0  ;;  %v971_v23 = vpop.f32.mrb[35].mxu1  ;;  %v1039_v0 = vmul.f32 0.01, %v968_v14  ;;  %v1040_v60 = vmul.f32 0.01, %v897_v30  ;;  %v970_v15 = vadd.f32 %v969_v35, %v812_v42 }
 0x2fd   :  { %v899_v13 = vadd.f32 %v898_v5, %v812_v42  ;;  %v1068_v9 = vsel %vm1004_vm5, %v893_v21, %v1036_v41  ;;  %vm1007_vm9 = vcmp.ge.f32.partialorder %v968_v14, 0.0  ;;  %v972_v50 = vadd.f32 %v971_v23, %v812_v42 }
 0x2fe   :  { %v2183_v18 = vsel %vm1006_vm6, %v966_v4, %v1038_v39  ;;  %v1072_v55 = vsel %vm1008_vm8, %v897_v30, %v1040_v60  ;;  %vm1010_vm10 = vcmp.ge.f32.partialorder %v970_v15, 0.0  ;;  %v1042_v52 = vmul.f32 0.01, %v970_v15 }
 0x2ff   :  { %v902_v40 = vpop.f32.mrb[36].mxu0  ;;  %v1101_v10 = vpack.c.bf16 %v1072_v55, %v1068_v9  ;;  %vm1009_vm11 = vcmp.ge.f32.partialorder %v899_v13, 0.0  ;;  %v1041_v47 = vmul.f32 0.01, %v899_v13  ;;  %v1069_v53 = vsel %vm1005_vm7, %v895_v44, %v1037_v26 }
 0x300   :  { %v975_v37 = vpop.f32.mrb[36].mxu1  ;;  %v1074_v6 = vsel %vm1010_vm10, %v970_v15, %v1042_v52  ;;  %v903_v43 = vadd.f32 %v902_v40, %v816_v27  ;;  %v904_v25 = vpop.f32.mrb[37].mxu0  ;;  %v1071_v36 = vsel %vm1007_vm9, %v968_v14, %v1039_v0  ;;  %v1043_v3 = vmul.f32 0.01, %v972_v50 }
 0x301   :  { %v976_v8 = vadd.f32 %v975_v37, %v816_v27  ;;  %v977_v32 = vpop.f32.mrb[37].mxu1  ;;  %v1103_v24 = vpack.c.bf16 %v1074_v6, %v2183_v18  ;;  %v905_v28 = vadd.f32 %v904_v25, %v816_v27  ;;  %v906_v57 = vpop.f32.mrb[38].mxu0  ;;  %vm1011_vm12 = vcmp.ge.f32.partialorder %v972_v50, 0.0 }
 0x302   :  { %v978_v29 = vadd.f32 %v977_v32, %v816_v27  ;;  %v979_v51 = vpop.f32.mrb[38].mxu1  ;;  %vm1012_vm13 = vcmp.ge.f32.partialorder %v903_v43, 0.0  ;;  %v1044_v34 = vmul.f32 0.01, %v903_v43  ;;  %v1073_v59 = vsel %vm1009_vm11, %v899_v13, %v1041_v47  ;;  %v908_v2 = vpop.f32.mrb[39].mxu0 }
 0x303   :  { %vm1014_vm14 = vcmp.ge.f32.partialorder %v976_v8, 0.0  ;;  %v1046_v22 = vmul.f32 0.01, %v976_v8  ;;  %vm1013_vm15 = vcmp.ge.f32.partialorder %v905_v28, 0.0  ;;  %v1045_v48 = vmul.f32 0.01, %v905_v28  ;;  %v836_v32 = vpop.permute.xlu1 %835 }
 0x304   :  { %vm1015_vm0 = vcmp.ge.f32.partialorder %v978_v29, 0.0  ;;  %v1047_v46 = vmul.f32 0.01, %v978_v29  ;;  %v907_v62 = vadd.f32 %v906_v57, %v820_v20  ;;  %v980_v1 = vadd.f32 %v979_v51, %v820_v20  ;;  %v981_v63 = vpop.f32.mrb[39].mxu1 }
 0x305   :  { %v909_v31 = vadd.f32 %v908_v2, %v820_v20  ;;  %v982_v33 = vadd.f32 %v981_v63, %v820_v20  ;;  %v1102_v16 = vpack.c.bf16 %v1073_v59, %v1069_v53  ;;  %v1075_v49 = vsel %vm1011_vm12, %v972_v50, %v1043_v3 }
 0x306   :  { %vm1016_vm1 = vcmp.ge.f32.partialorder %v907_v62, 0.0  ;;  %v1048_v54 = vmul.f32 0.01, %v907_v62  ;;  %vm1018_vm3 = vcmp.ge.f32.partialorder %v980_v1, 0.0  ;;  %v1050_v56 = vmul.f32 0.01, %v980_v1 }
 0x307   :  { %v1076_v11 = vsel %vm1012_vm13, %v903_v43, %v1044_v34  ;;  %v2192_v42 = vsel %vm1014_vm14, %v976_v8, %v1046_v22  ;;  %vm1017_vm4 = vcmp.ge.f32.partialorder %v909_v31, 0.0  ;;  %v1049_v27 = vmul.f32 0.01, %v909_v31  ;;  %1124 = vmatprep.subr.bf16.mxu0 %v1102_v16  ;;  %v912_v61 = vpop.f32.mrb[40].mxu0 }
 0x308   :  { %v1080_v58 = vsel %vm1016_vm1, %v907_v62, %v1048_v54  ;;  %v2194_v21 = vsel %vm1018_vm3, %v980_v1, %v1050_v56  ;;  %vm1019_vm5 = vcmp.ge.f32.partialorder %v982_v33, 0.0  ;;  %v1104_v7 = vpack.c.bf16 %v1075_v49, %v1071_v36  ;;  %1125 = vmatpush1.bf16.msra.mxu0 %v1101_v10  ;;  %v985_v4 = vpop.f32.mrb[40].mxu1  ;;  %v914_v14 = vpop.f32.mrb[41].mxu0 }
 0x309   :  { %v1105_v44 = vpack.c.bf16 %v1080_v58, %v1076_v11  ;;  %v1107_v17 = vpack.c.bf16 %v2194_v21, %v2192_v42  ;;  %v913_v38 = vadd.f32 %v912_v61, %v824_v12  ;;  %v986_v41 = vadd.f32 %v985_v4, %v824_v12  ;;  %v987_v30 = vpop.f32.mrb[41].mxu1  ;;  %v916_v26 = vpop.f32.mrb[42].mxu0 }
 0x30a   :  { %v1051_v35 = vmul.f32 0.01, %v982_v33  ;;  %1165 = vmatprep.subr.bf16.mxu1 %v1104_v7  ;;  %v2198_v5 = vadd.f32 %v914_v14, %v824_v12  ;;  %v2200_v39 = vadd.f32 %v987_v30, %v824_v12  ;;  %v989_v23 = vpop.f32.mrb[42].mxu1  ;;  %v1077_v0 = vsel %vm1013_vm15, %v905_v28, %v1045_v48  ;;  %v918_v20 = vpop.f32.mrb[43].mxu0 }
 0x30b   :  { %1166 = vmatpush1.bf16.msra.mxu1 %v1103_v24  ;;  %vm1020_vm6 = vcmp.ge.f32.partialorder %v913_v38, 0.0  ;;  %v1052_v60 = vmul.f32 0.01, %v913_v38  ;;  %v1081_v15 = vsel %vm1017_vm4, %v909_v31, %v1049_v27  ;;  %v1079_v13 = vsel %vm1015_vm0, %v978_v29, %v1047_v46  ;;  %v991_v10 = vpop.f32.mrb[43].mxu1  ;;  %v832_v36 = vpop.permute.xlu0 %831 }
 0x30c   :  { %vm1022_vm7 = vcmp.ge.f32.partialorder %v986_v41, 0.0  ;;  %v1054_v9 = vmul.f32 0.01, %v986_v41  ;;  %vm1021_vm8 = vcmp.ge.f32.partialorder %v2198_v5, 0.0  ;;  %v1053_v50 = vmul.f32 0.01, %v2198_v5 }
 0x30d   :  { %v2207_v18 = vsel %vm1020_vm6, %v913_v38, %v1052_v60  ;;  %v2210_v55 = vmul.f32 0.01, %v2200_v39  ;;  %v917_v52 = vadd.f32 %v916_v26, %v828_v19  ;;  %v990_v40 = vadd.f32 %v989_v23, %v828_v19 }
 0x30e   :  { %v919_v47 = vadd.f32 %v918_v20, %v828_v19  ;;  %v2212_v37 = vadd.f32 %v991_v10, %v828_v19  ;;  %v1106_v53 = vpack.c.bf16 %v1081_v15, %v1077_v0  ;;  %v1083_v6 = vsel %vm1019_vm5, %v982_v33, %v1051_v35  ;;  %v1659_v20 = vld [vmem:[%s2508_s1 + $0x10] sm:$0xff] }
 0x30f   :  { %v922_v43 = vpop.f32.mrb[44].mxu0  ;;  %vm1023_vm9 = vcmp.ge.f32.partialorder %v2200_v39, 0.0  ;;  %vm1024_vm10 = vcmp.ge.f32.partialorder %v917_v52, 0.0  ;;  %v1056_v8 = vmul.f32 0.01, %v917_v52  ;;  %vm1026_vm11 = vcmp.ge.f32.partialorder %v990_v40, 0.0 }
 0x310   :  { %v1058_v25 = vmul.f32 0.01, %v990_v40  ;;  %v2217_v24 = vsel %vm1022_vm7, %v986_v41, %v1054_v9  ;;  %vm1025_vm12 = vcmp.ge.f32.partialorder %v919_v47, 0.0  ;;  %v1057_v3 = vmul.f32 0.01, %v919_v47  ;;  %1126 = vmatprep.subr.bf16.mxu0 %v1106_v53  ;;  %v995_v34 = vpop.f32.mrb[44].mxu1 }
 0x311   :  { %vm1027_vm13 = vcmp.ge.f32.partialorder %v2212_v37, 0.0  ;;  %v1088_v28 = vsel %vm1024_vm10, %v917_v52, %v1056_v8  ;;  %v1108_v57 = vpack.c.bf16 %v1083_v6, %v1079_v13  ;;  %1127 = vmatpush1.bf16.msra.mxu0 %v1105_v44  ;;  %v923_v51 = vadd.f32 %v922_v43, %v832_v36  ;;  %v924_v59 = vpop.f32.mrb[45].mxu0  ;;  %v997_v1 = vpop.f32.mrb[45].mxu1 }
 0x312   :  { %v1090_v29 = vsel %vm1026_vm11, %v990_v40, %v1058_v25  ;;  %v1109_v22 = vpack.c.bf16 %v1088_v28, %v2207_v18  ;;  %v996_v46 = vadd.f32 %v995_v34, %v832_v36  ;;  %v925_v62 = vadd.f32 %v924_v59, %v832_v36  ;;  %v926_v2 = vpop.f32.mrb[46].mxu0  ;;  %v999_v16 = vpop.f32.mrb[46].mxu1  ;;  %v1658_v40 = vld [vmem:[%s2508_s1] sm:$0xff] }
 0x313   :  { %v1111_v48 = vpack.c.bf16 %v1090_v29, %v2217_v24  ;;  %1167 = vmatprep.subr.bf16.mxu1 %v1108_v57  ;;  %vm1028_vm14 = vcmp.ge.f32.partialorder %v923_v51, 0.0  ;;  %v1060_v63 = vmul.f32 0.01, %v923_v51  ;;  %v998_v31 = vadd.f32 %v997_v1, %v832_v36  ;;  %v928_v49 = vpop.f32.mrb[47].mxu0  ;;  %v1001_v11 = vpop.f32.mrb[47].mxu1 }
 0x314   :  { %v927_v33 = vadd.f32 %v926_v2, %v836_v32  ;;  %v1059_v54 = vmul.f32 0.01, %v2212_v37  ;;  %1168 = vmatpush1.bf16.msra.mxu1 %v1107_v17  ;;  %vm1030_vm15 = vcmp.ge.f32.partialorder %v996_v46, 0.0  ;;  %v1062_v56 = vmul.f32 0.01, %v996_v46 }
 0x315   :  { %vm1029_vm0 = vcmp.ge.f32.partialorder %v925_v62, 0.0  ;;  %v1092_v19 = vsel %vm1028_vm14, %v923_v51, %v1060_v63  ;;  %v1061_v12 = vmul.f32 0.01, %v925_v62  ;;  %vm1031_vm1 = vcmp.ge.f32.partialorder %v998_v31, 0.0 }
 0x316   :  { %vm1032_vm3 = vcmp.ge.f32.partialorder %v927_v33, 0.0  ;;  %v1063_v27 = vmul.f32 0.01, %v998_v31  ;;  %v1064_v58 = vmul.f32 0.01, %v927_v33  ;;  %v1000_v7 = vadd.f32 %v999_v16, %v836_v32 }
 0x317   :  { %v929_v61 = vadd.f32 %v928_v49, %v836_v32  ;;  %v1094_v4 = vsel %vm1030_vm15, %v996_v46, %v1062_v56  ;;  %v1002_v44 = vadd.f32 %v1001_v11, %v836_v32  ;;  %v1085_v38 = vsel %vm1021_vm8, %v2198_v5, %v1053_v50 }
 0x318   :  { %v1089_v42 = vsel %vm1025_vm12, %v919_v47, %v1057_v3  ;;  %v1096_v21 = vsel %vm1032_vm3, %v927_v33, %v1064_v58  ;;  %vm1034_vm4 = vcmp.ge.f32.partialorder %v1000_v7, 0.0  ;;  %v1066_v17 = vmul.f32 0.01, %v1000_v7  ;;  %v1660_v47 = vld [vmem:[%s2508_s1 + $0x18] sm:$0xff] }
 0x319   :  { %vm1033_vm5 = vcmp.ge.f32.partialorder %v929_v61, 0.0  ;;  %v1113_v41 = vpack.c.bf16 %v1096_v21, %v1092_v19  ;;  %v1065_v14 = vmul.f32 0.01, %v929_v61  ;;  %vm1035_vm6 = vcmp.ge.f32.partialorder %v1002_v44, 0.0 }
 0x31a   :  { %v1067_v30 = vmul.f32 0.01, %v1002_v44  ;;  %v1098_v35 = vsel %vm1034_vm4, %v1000_v7, %v1066_v17  ;;  %v1110_v26 = vpack.c.bf16 %v1089_v42, %v1085_v38  ;;  %v1087_v23 = vsel %vm1023_vm9, %v2200_v39, %v2210_v55  ;;  %v1100_v39 = vld [vmem:[%s2511_s4] sm:$0xf]  ;;  %v1657_v55 = vld [vmem:[%s2508_s1 + $0x8] sm:$0xff]  ;;  %s2272_s1 = sld [smem:[#allocation2 + $0x1]] }
 0x31b   :  { %v1091_v5 = vsel %vm1027_vm13, %v2212_v37, %v1059_v54  ;;  %v1115_v0 = vpack.c.bf16 %v1098_v35, %v1094_v4  ;;  %v1093_v15 = vsel %vm1029_vm0, %v925_v62, %v1061_v12  ;;  %v1097_v13 = vsel %vm1033_vm5, %v929_v61, %v1065_v14 }
 0x31c   :  { %v1112_v60 = vpack.c.bf16 %v1091_v5, %v1087_v23  ;;  %1128 = vmatprep.subr.bf16.mxu0 %v1110_v26  ;;  %v1114_v9 = vpack.c.bf16 %v1097_v13, %v1093_v15  ;;  %v1095_v50 = vsel %vm1031_vm1, %v998_v31, %v1063_v27  ;;  %v1099_v18 = vsel %vm1035_vm6, %v1002_v44, %v1067_v30 }
 0x31d   :  { %1129 = vmatpush1.bf16.msra.mxu0 %v1109_v22  ;;  %v1116_v52 = vpack.c.bf16 %v1099_v18, %v1095_v50  ;;  %vm1207_vm7 = vcmp.lt.f32.partialorder %v1657_v55, 0.0  ;;  %vm1206_vm8 = vcmp.lt.f32.partialorder %v1658_v40, 0.0  ;;  %vm1208_vm9 = vcmp.lt.f32.partialorder %v1659_v20, 0.0 }
 0x31e   :  { %1169 = vmatprep.subr.bf16.mxu1 %v1112_v60  ;;  %1130 = vmatprep.subr.bf16.mxu0 %v1114_v9  ;;  %v1211_v10 = vsel %vm1207_vm7, 1, %v2516_v45  ;;  %v1210_v37 = vsel %vm1206_vm8, 1, %v2516_v45  ;;  %v1212_v53 = vsel %vm1208_vm9, 1, %v2516_v45  ;;  %v1230_v32 = vlaneseq }
 0x31f   :  { %1170 = vmatpush1.bf16.msra.mxu1 %v1111_v48  ;;  %v1215_v6 = vrot.slane %v1211_v10, 3  ;;  %v1214_v8 = vrot.slane %v1210_v37, 3  ;;  %v1216_v25 = vrot.slane %v1212_v53, 3  ;;  %v1119_v48 = vpop.permute.xlu0 %1118  ;;  %v1254_v62 = vrot.slane %v1658_v40, 1 }
 0x320   :  { %1171 = vmatprep.subr.bf16.mxu1 %v1116_v52  ;;  %v1231_v24 = vshrl.u32 %v1230_v32, 7  ;;  %v1255_v1 = vrot.slane %v1657_v55, 1  ;;  %v1256_v2 = vrot.slane %v1659_v20, 1  ;;  %v1257_v31 = vrot.slane %v1660_v47, 1 }
 0x321   :  { %1131 = vmatpush1.bf16.msra.mxu0 %v1113_v41  ;;  %vm1219_vm10 = vcmp.ne.s32.totalorder %v1215_v6, 0  ;;  %vm1218_vm11 = vcmp.ne.s32.totalorder %v1214_v8, 0  ;;  %vm1220_vm12 = vcmp.ne.s32.totalorder %v1216_v25, 0  ;;  %v2299_v14 = vstv %s2272_s1 }
 0x322   :  { %vm1223_vm13 = vmand %vm1207_vm7, %vm1219_vm10  ;;  %v1232_v3 = vsub.s32 0, %v1231_v24  ;;  %v2315_v37 = vstv %s2278_s26  ;;  %v2328_v32 = vstv %s2290_s28 }
 0x323   :  { %1172 = vmatpush1.bf16.msra.mxu1 %v1115_v0  ;;  %vm1222_vm15 = vmand %vm1206_vm8, %vm1218_vm11  ;;  %v1227_v29 = vsel %vm1223_vm13, 1, %v2516_v45 }
 0x324   :  { %1624 = vmatmul.mubr.msk.bf16.vlgmr.msra.gmra.mrb[48].mxu0 %vm471_vm2, %v1100_v39  ;;  %vm1224_vm0 = vmand %vm1208_vm9, %vm1220_vm12  ;;  %v1226_v28 = vsel %vm1222_vm15, 1, %v2516_v45  ;;  %v1237_v22 = vrot.slane %v1227_v29, %v1232_v3  ;;  %vm1552_vm15 = vcmask 1041408  }
 0x325   :  { %v1228_v57 = vsel %vm1224_vm0, 1, %v2516_v45  ;;  %v1233_v34 = vrot.slane %v1226_v28, %v1232_v3  ;;  %vm1557_vm0 = vcmask 1042432  }
 0x326   :  { %1625 = vmatmul.mubr.msk.bf16.vlgmr.msra.gmra.mrb[48].mxu1 %vm471_vm2, %v1100_v39  ;;  %vm1209_vm2 = vcmp.lt.f32.partialorder %v1660_v47, 0.0  ;;  %v1241_v59 = vrot.slane %v1228_v57, %v1232_v3  ;;  %vm1247_vm5 = vcmp.eq.s32.totalorder %v1237_v22, 1  ;;  %v2312_v47 = vstv %s2276_s25 }
 0x327   :  { %v1213_v43 = vsel %vm1209_vm2, 1, %v2516_v45  ;;  %vm1246_vm3 = vcmp.eq.s32.totalorder %v1233_v34, 1 }
 0x328   :  { %v1217_v36 = vrot.slane %v1213_v43, 3  ;;  %vm1248_vm4 = vcmp.eq.s32.totalorder %v1241_v59, 1  ;;  %v2322_v43 = vstv %s2284_s27 }
 0x32a   :  { %vm1221_vm14 = vcmp.ne.s32.totalorder %v1217_v36, 0 }
 0x32b   :  { %vm1225_vm1 = vmand %vm1209_vm2, %vm1221_vm14  ;;  %vm1547_vm14 = vcmask 1040384  }
 0x32c   :  { %v1229_v51 = vsel %vm1225_vm1, 1, %v2516_v45  ;;  %vm1562_vm1 = vcmask 1045504  }
 0x32d   :  { %v1245_v46 = vrot.slane %v1229_v51, %v1232_v3 }
 0x32f   :  { %vm1249_vm6 = vcmp.eq.s32.totalorder %v1245_v46, 1 }
 0x3f7   :  { %v1158_v63 = vpop.f32.mrb[48].mxu0 }
 0x3f8   :  { %v1159_v33 = vadd.f32 %v1158_v63, %v1119_v48  ;;  %v1160_v49 = vpop.f32.mrb[49].mxu0 }
 0x3f9   :  { %v1199_v16 = vpop.f32.mrb[48].mxu1  ;;  %v1161_v45 = vadd.f32 %v1160_v49, %v1119_v48  ;;  %v1162_v19 = vpop.f32.mrb[50].mxu0 }
 0x3fa   :  { %v1200_v54 = vadd.f32 %v1199_v16, %v1119_v48  ;;  %v1201_v56 = vpop.f32.mrb[49].mxu1  ;;  %v2274_v12 = vsel %vm1246_vm3, %v1159_v33, %v1254_v62  ;;  %v1163_v58 = vpop.f32.mrb[51].mxu0 }
 0x3fb   :  { %v1202_v11 = vadd.f32 %v1201_v56, %v1119_v48  ;;  %v1203_v27 = vpop.f32.mrb[50].mxu1  ;;  %v2282_v61 = vsel %vm1247_vm5, %v1161_v45, %v1255_v1  ;;  %v1266_v44 = vmul.f32 %v2274_v12, %v2274_v12  ;;  %v1343_v26 = vrot.slane %v2274_v12, 6 }
 0x3fc   :  { %v2280_v7 = vsel %vm1248_vm4, %v1200_v54, %v1256_v2  ;;  %v1204_v4 = vpop.f32.mrb[51].mxu1  ;;  %v1267_v42 = vmul.f32 %v2282_v61, %v2282_v61  ;;  %v1344_v23 = vrot.slane %v2282_v61, 6  ;;  %v1355_v6 = vrot.slane %v2274_v12, 4 }
 0x3fd   :  { %v2288_v38 = vsel %vm1249_vm6, %v1202_v11, %v1257_v31  ;;  %v1268_v21 = vmul.f32 %v2280_v7, %v2280_v7  ;;  %v1274_v41 = vrot.slane %v1266_v44, 1  ;;  %v1286_v60 = vrot.slane %v1266_v44, 2 }
 0x3fe   :  { %v1269_v17 = vmul.f32 %v2288_v38, %v2288_v38  ;;  %v1275_v30 = vrot.slane %v1267_v42, 1  ;;  %v1345_v15 = vrot.slane %v2280_v7, 6  ;;  %v1287_v50 = vrot.slane %v1267_v42, 2 }
 0x3ff   :  { %v1276_v35 = vrot.slane %v1268_v21, 1  ;;  %v1282_v0 = vadd.f32 %v1274_v41, %v1266_v44  ;;  %v1288_v18 = vrot.slane %v1268_v21, 2  ;;  %v1346_v40 = vrot.slane %v2288_v38, 6 }
 0x400   :  { %v1277_v5 = vrot.slane %v1269_v17, 1  ;;  %v1283_v13 = vadd.f32 %v1275_v30, %v1267_v42  ;;  %v1289_v39 = vrot.slane %v1269_v17, 2  ;;  %v1351_v8 = vmul.f32 %v1343_v26, %v2274_v12 }
 0x401   :  { %v1284_v9 = vadd.f32 %v1276_v35, %v1268_v21  ;;  %v2304_v55 = vadd.f32 %v1286_v60, %v1282_v0  ;;  %v1356_v25 = vrot.slane %v2282_v61, 4  ;;  %v1352_v36 = vmul.f32 %v1344_v23, %v2282_v61 }
 0x402   :  { %v1285_v52 = vadd.f32 %v1277_v5, %v1269_v17  ;;  %v2307_v20 = vadd.f32 %v1287_v50, %v1283_v13  ;;  %v1353_v24 = vmul.f32 %v1345_v15, %v2280_v7  ;;  %v1354_v3 = vmul.f32 %v1346_v40, %v2288_v38 }
 0x403   :  { %v2309_v10 = vadd.f32 %v1288_v18, %v1284_v9  ;;  %1648 = vrsqrt.f32 %v2304_v55  ;;  %v1303_v28 = vand.u32 2147483648, %v2304_v55  ;;  %vm1300_vm7 = vcmp.eq.f32.partialorder %v2304_v55, inf }
 0x404   :  { %v2317_v53 = vadd.f32 %v1289_v39, %v1285_v52  ;;  %1650 = vrsqrt.f32 %v2307_v20  ;;  %v1310_v29 = vand.u32 2147483648, %v2307_v20  ;;  %v1357_v34 = vrot.slane %v2280_v7, 4 }
 0x405   :  { %1652 = vrsqrt.f32 %v2309_v10  ;;  %v1317_v57 = vand.u32 2147483648, %v2309_v10  ;;  %v1358_v59 = vrot.slane %v2288_v38, 4  ;;  %v1363_v22 = vmul.f32 %v1355_v6, %v2274_v12 }
 0x406   :  { %1654 = vrsqrt.f32 %v2317_v53  ;;  %v1324_v51 = vand.u32 2147483648, %v2317_v53  ;;  %vm1302_vm8 = vcmp.eq.f32.partialorder %v2304_v55, 0.0  ;;  %vm1307_vm9 = vcmp.eq.f32.partialorder %v2307_v20, inf }
 0x407   :  { %v1364_v48 = vmul.f32 %v1356_v25, %v2282_v61  ;;  %v1409_v46 = vrot.slane %v2274_v12, 1  ;;  %v1410_v62 = vrot.slane %v2282_v61, 1  ;;  %v1411_v1 = vrot.slane %v2280_v7, 1 }
 0x408   :  { %vm1309_vm2 = vcmp.eq.f32.partialorder %v2307_v20, 0.0  ;;  %vm1314_vm10 = vcmp.eq.f32.partialorder %v2309_v10, inf  ;;  %v1365_v2 = vmul.f32 %v1357_v34, %v2280_v7  ;;  %v1366_v63 = vmul.f32 %v1358_v59, %v2288_v38 }
 0x409   :  { %v1371_v31 = vrot.slane %v1363_v22, 1  ;;  %v1412_v33 = vrot.slane %v2288_v38, 1  ;;  %vm1316_vm11 = vcmp.eq.f32.partialorder %v2309_v10, 0.0  ;;  %vm1321_vm12 = vcmp.eq.f32.partialorder %v2317_v53, inf }
 0x40a   :  { %v1372_v16 = vrot.slane %v1364_v48, 1  ;;  %v1437_v49 = vrot.slane %v2274_v12, 3  ;;  %v1438_v54 = vrot.slane %v2282_v61, 3  ;;  %v1439_v45 = vrot.slane %v2280_v7, 3 }
 0x40b   :  { %vm1323_vm13 = vcmp.eq.f32.partialorder %v2317_v53, 0.0  ;;  %v1373_v56 = vrot.slane %v1365_v2, 1  ;;  %v1374_v19 = vrot.slane %v1366_v63, 1  ;;  %v1379_v11 = vsub.f32 %v1351_v8, %v1371_v31 }
 0x40c   :  { %v1440_v27 = vrot.slane %v2288_v38, 3  ;;  %v1380_v58 = vsub.f32 %v1352_v36, %v1372_v16  ;;  %v2362_v4 = vmul.f32 %v1437_v49, %v2274_v12  ;;  %v2365_v44 = vmul.f32 %v1438_v54, %v2282_v61 }
 0x40d   :  { %v2368_v42 = vmul.f32 %v1439_v45, %v2280_v7  ;;  %v1649_v21 = vpop.eup %1648  ;;  %v1381_v17 = vsub.f32 %v1353_v24, %v1373_v56  ;;  %v1382_v41 = vsub.f32 %v1354_v3, %v1374_v19  ;;  %v2371_v30 = vmul.f32 %v2299_v14, %v1379_v11 }
 0x40e   :  { %v2374_v35 = vmul.f32 %v1440_v27, %v2288_v38  ;;  %v1651_v26 = vpop.eup %1650  ;;  %v1299_v23 = vmul.f32 %v1649_v21, %v2304_v55  ;;  %v2378_v5 = vmul.f32 %v2299_v14, %v1380_v58  ;;  %v1449_v0 = vrot.slane %v2274_v12, 7 }
 0x40f   :  { %v1450_v60 = vrot.slane %v2282_v61, 7  ;;  %v1653_v15 = vpop.eup %1652  ;;  %v1306_v13 = vmul.f32 %v1651_v26, %v2307_v20  ;;  %v2384_v9 = vmul.f32 %v2299_v14, %v1381_v17  ;;  %v2387_v50 = vmul.f32 %v2299_v14, %v1382_v41 }
 0x410   :  { %v1392_v18 = vrot.slane %v2371_v30, 4  ;;  %v1655_v52 = vpop.eup %1654  ;;  %v1301_v39 = vsel %vm1300_vm7, %v2304_v55, %v1299_v23  ;;  %v1313_v40 = vmul.f32 %v1653_v15, %v2309_v10  ;;  %v1393_v6 = vrot.slane %v2378_v5, 4 }
 0x411   :  { %v1451_v8 = vrot.slane %v2280_v7, 7  ;;  %v1304_v25 = vsel %vm1302_vm8, %v1303_v28, %v1301_v39  ;;  %v1308_v36 = vsel %vm1307_vm9, %v2307_v20, %v1306_v13  ;;  %v1320_v24 = vmul.f32 %v1655_v52, %v2317_v53 }
 0x412   :  { %v1394_v3 = vrot.slane %v2384_v9, 4  ;;  %v1311_v34 = vsel %vm1309_vm2, %v1310_v29, %v1308_v36  ;;  %v1315_v59 = vsel %vm1314_vm10, %v2309_v10, %v1313_v40  ;;  %v1327_v22 = vmul.f32 %v2312_v47, %v1304_v25 }
 0x413   :  { %v1395_v55 = vrot.slane %v2387_v50, 4  ;;  %v1318_v28 = vsel %vm1316_vm11, %v1317_v57, %v1315_v59  ;;  %v1322_v48 = vsel %vm1321_vm12, %v2317_v53, %v1320_v24  ;;  %v1328_v20 = vmul.f32 %v2312_v47, %v1311_v34 }
 0x414   :  { %v1452_v29 = vrot.slane %v2288_v38, 7  ;;  %v1325_v2 = vsel %vm1323_vm13, %v1324_v51, %v1322_v48  ;;  %v1329_v63 = vmul.f32 %v2312_v47, %v1318_v28  ;;  %v1331_v31 = vmul.f32 %v1327_v22, %v2274_v12 }
 0x415   :  { %v1417_v16 = vmul.f32 %v1409_v46, %v1327_v22  ;;  %v1330_v10 = vmul.f32 %v2312_v47, %v1325_v2  ;;  %v1332_v57 = vmul.f32 %v1328_v20, %v2282_v61  ;;  %v1418_v49 = vmul.f32 %v1410_v62, %v1328_v20 }
 0x416   :  { %v1457_v54 = vmul.f32 %v1449_v0, %v2274_v12  ;;  %v1333_v45 = vmul.f32 %v1329_v63, %v2280_v7  ;;  %v1335_v56 = vsub.f32 %v2274_v12, %v1331_v31  ;;  %v1419_v53 = vmul.f32 %v1411_v1, %v1329_v63 }
 0x417   :  { %v1425_v51 = vrot.slane %v1417_v16, 7  ;;  %v1334_v19 = vmul.f32 %v1330_v10, %v2288_v38  ;;  %v1336_v11 = vsub.f32 %v2282_v61, %v1332_v57  ;;  %v1420_v46 = vmul.f32 %v1412_v33, %v1330_v10 }
 0x418   :  { %v1426_v27 = vrot.slane %v1418_v49, 7  ;;  %v1337_v47 = vsub.f32 %v2280_v7, %v1333_v45  ;;  %v1400_v58 = vadd.f32 %v1392_v18, %v1335_v56  ;;  %v1427_v62 = vrot.slane %v1419_v53, 7 }
 0x419   :  { %v1433_v21 = vsub.f32 %v2274_v12, %v1425_v51  ;;  %v1338_v17 = vsub.f32 %v2288_v38, %v1334_v19  ;;  %v1401_v41 = vadd.f32 %v1393_v6, %v1336_v11  ;;  %v1428_v26 = vrot.slane %v1420_v46, 7 }
 0x41a   :  { %v1434_v23 = vsub.f32 %v2282_v61, %v1426_v27  ;;  %v1402_v1 = vadd.f32 %v1394_v3, %v1337_v47  ;;  %v1405_v0 = vadd.f32 %v2315_v37, %v1400_v58  ;;  %v1435_v15 = vsub.f32 %v2280_v7, %v1427_v62 }
 0x41b   :  { %v1458_v33 = vmul.f32 %v1450_v60, %v2282_v61  ;;  %v1403_v13 = vadd.f32 %v1395_v55, %v1338_v17  ;;  %v1406_v52 = vadd.f32 %v2315_v37, %v1401_v41  ;;  %v1436_v18 = vsub.f32 %v2288_v38, %v1428_v26 }
 0x41c   :  { %v1459_v39 = vmul.f32 %v1451_v8, %v2280_v7  ;;  %v1407_v40 = vadd.f32 %v2315_v37, %v1402_v1  ;;  %v1460_v6 = vmul.f32 %v1452_v29, %v2288_v38  ;;  %v1465_v25 = vrot.slane %v1457_v54, 6 }
 0x41d   :  { %v1466_v36 = vrot.slane %v1458_v33, 6  ;;  %v1408_v24 = vadd.f32 %v2315_v37, %v1403_v13  ;;  %v1502_v34 = vrot.slane %v2274_v12, 2  ;;  %v1503_v60 = vrot.slane %v2282_v61, 2 }
 0x41e   :  { %v1467_v3 = vrot.slane %v1459_v39, 6  ;;  %v1468_v59 = vrot.slane %v1460_v6, 6  ;;  %v1473_v55 = vsub.f32 %v2362_v4, %v1465_v25  ;;  %v1504_v8 = vrot.slane %v2280_v7, 2 }
 0x41f   :  { %v1474_v28 = vsub.f32 %v2365_v44, %v1466_v36  ;;  %v1505_v29 = vrot.slane %v2288_v38, 2  ;;  %v1510_v2 = vmul.f32 %v1502_v34, %v1327_v22  ;;  %v1511_v31 = vmul.f32 %v1503_v60, %v1328_v20 }
 0x420   :  { %v1475_v48 = vsub.f32 %v2368_v42, %v1467_v3  ;;  %v1476_v37 = vsub.f32 %v2374_v35, %v1468_v59  ;;  %v1477_v16 = vmul.f32 %v1473_v55, %v2299_v14  ;;  %v1512_v49 = vmul.f32 %v1504_v8, %v1329_v63 }
 0x421   :  { %v1478_v57 = vmul.f32 %v1474_v28, %v2299_v14  ;;  %v1513_v54 = vmul.f32 %v1505_v29, %v1330_v10  ;;  %v1518_v44 = vrot.slane %v1510_v2, 6  ;;  %v1519_v45 = vrot.slane %v1511_v31, 6 }
 0x422   :  { %v1479_v4 = vmul.f32 %v1475_v48, %v2299_v14  ;;  %v1480_v42 = vmul.f32 %v1476_v37, %v2299_v14  ;;  %v1485_v56 = vrot.slane %v1477_v16, 4  ;;  %v1520_v22 = vrot.slane %v1512_v49, 6 }
 0x423   :  { %v1486_v53 = vrot.slane %v1478_v57, 4  ;;  %v1521_v51 = vrot.slane %v1513_v54, 6  ;;  %v1526_v35 = vsub.f32 %v2274_v12, %v1518_v44  ;;  %v1527_v19 = vsub.f32 %v2282_v61, %v1519_v45 }
 0x424   :  { %v1487_v20 = vrot.slane %v1479_v4, 4  ;;  %v1488_v11 = vrot.slane %v1480_v42, 4  ;;  %v1493_v63 = vadd.f32 %v1485_v56, %v1433_v21  ;;  %v1528_v27 = vsub.f32 %v2280_v7, %v1520_v22 }
 0x425   :  { %v1494_v46 = vadd.f32 %v1486_v53, %v1434_v23  ;;  %v1529_v47 = vsub.f32 %v2288_v38, %v1521_v51  ;;  %v1530_v58 = vrot.slane %v2371_v30, 1  ;;  %v1531_v14 = vrot.slane %v2378_v5, 1 }
 0x426   :  { %v1495_v10 = vadd.f32 %v1487_v20, %v1435_v15  ;;  %v1496_v62 = vadd.f32 %v1488_v11, %v1436_v18  ;;  %v1498_v17 = vadd.f32 %v2322_v43, %v1493_v63  ;;  %v1532_v26 = vrot.slane %v2384_v9, 1 }
 0x427   :  { %v1499_v41 = vadd.f32 %v2322_v43, %v1494_v46  ;;  %v1533_v21 = vrot.slane %v2387_v50, 1  ;;  %v1538_v23 = vadd.f32 %v1530_v58, %v1526_v35  ;;  %v1539_v33 = vadd.f32 %v1531_v14, %v1527_v19 }
 0x428   :  { %v1500_v1 = vadd.f32 %v2322_v43, %v1495_v10  ;;  %v1501_v15 = vadd.f32 %v2322_v43, %v1496_v62  ;;  %v1540_v13 = vadd.f32 %v1532_v26, %v1528_v27  ;;  %v1548_v30 = vsel %vm1547_vm14, %v1405_v0, %v1498_v17 }
 0x429   :  { %v1549_v5 = vsel %vm1547_vm14, %v1406_v52, %v1499_v41  ;;  %v1541_v18 = vadd.f32 %v1533_v21, %v1529_v47  ;;  %v1543_v39 = vadd.f32 %v2328_v32, %v1538_v23  ;;  %v1544_v6 = vadd.f32 %v2328_v32, %v1539_v33 }
 0x42a   :  { %v1550_v9 = vsel %vm1547_vm14, %v1407_v40, %v1500_v1  ;;  %v1545_v25 = vadd.f32 %v2328_v32, %v1540_v13  ;;  %v1551_v50 = vsel %vm1547_vm14, %v1408_v24, %v1501_v15 }
 0x42b   :  { %v1546_v36 = vadd.f32 %v2328_v32, %v1541_v18  ;;  %v1553_v43 = vsel %vm1552_vm15, %v1548_v30, %v1543_v39  ;;  %v1554_v0 = vsel %vm1552_vm15, %v1549_v5, %v1544_v6 }
 0x42c   :  { %v1555_v52 = vsel %vm1552_vm15, %v1550_v9, %v1545_v25  ;;  %v1558_v3 = vsel %vm1557_vm0, %v1553_v43, %v2274_v12  ;;  %v1559_v40 = vsel %vm1557_vm0, %v1554_v0, %v2282_v61 }
 0x42d   :  { %v1556_v34 = vsel %vm1552_vm15, %v1551_v50, %v1546_v36  ;;  %v1560_v24 = vsel %vm1557_vm0, %v1555_v52, %v2280_v7  ;;  %v1563_v32 = vsel %vm1562_vm1, %v1558_v3, 0.0  ;;  %v1564_v60 = vsel %vm1562_vm1, %v1559_v40, 0.0 }
 0x42e   :  { %v1561_v59 = vsel %vm1557_vm0, %v1556_v34, %v2288_v38  ;;  %v1565_v55 = vsel %vm1562_vm1, %v1560_v24, 0.0  ;;  %1567 = vst [vmem:[#allocation5] sm:$0xff] %v1563_v32  ;;  %1568 = vst [vmem:[#allocation5 + $0x8] sm:$0xff] %v1564_v60 }
 0x42f   :  { %v1566_v12 = vsel %vm1562_vm1, %v1561_v59, 0.0  ;;  %1569 = vst [vmem:[#allocation5 + $0x10] sm:$0xff] %v1565_v55 }
 0x430   :  { %1570 = vst [vmem:[#allocation5 + $0x18] sm:$0xff] %v1566_v12 }
 0x431   :  { %1684 = shalt.err (!%p1681_p9)
}
 0x432   :  { %s1685_s8 = scalar_lea.hbm %s2513_s6, 512 }
 0x433   :  { %p1686_p10 = scmp.ne.s32.totalorder %s2513_s6, %s1685_s8  ;;  %p1689_p11 = scmp.lt.u32.totalorder %s1685_s8, %s2513_s6 }
 0x435   :  { %p1691_p12 = pnand %p1689_p11, %p1686_p10 }
 0x437   :  { %1694 = shalt.err (!%p1691_p12)
}
 0x438   :  { %1580 = dma.vmem_to_hbm [thread:$0]  %s1578_s29, 512, %s2513_s6, [#allocation3]  }
 0x439   :  { %1697 = dma.done.wait [#allocation3], 512  }
 0x43a   :  { %1698 = vsyncadd [#allocation3], 4294966784 }
 0x43b   :  { %1584 = vsyncpa [#allocation3], 1 }
 0x43c   :  { %1585 = vsyncpa [#allocation4], 1 }

</bundles_post_ra>
